<compile_context>
chip_gen: v5e
topology: v5e:2x2
jax: 0.10.0
libtpu: 0.0.40
codegen_flags: <defaults>
</compile_context>

<pallas_src>
import functools

import jax
import jax.numpy as jnp
from jax.experimental import pallas as pl
from jax.experimental.pallas import tpu as pltpu


def _graph_attn_bias_kernel(pack_ref, t_ref, edge_ref, w_ref, out_ref, *, num_heads):
    """One block of flattened attention-bias rows.

    pack_ref : (bm, pk)    bf16  cols [0:H]   = spatial-pos bias (border-masked)
                                 col  H       = not_border / spatial normalizer
                                 col  H+1     = border flag (row==0 or col==0)
    t_ref    : (1, H)      f32   graph-token virtual-distance embedding
    edge_ref : (bm, D*F*H) bf16  flattened per-hop / per-feature edge embeddings
    w_ref    : (D*F*H, H)  bf16  stacked head-mixing weights (already scaled by 1/F)
    out_ref  : (bm, H)     f32   (2*attn_bias residual is added outside the kernel)
    """
    H = num_heads
    pack = pack_ref[...].astype(jnp.float32)
    spb = pack[:, :H]               # spatial-pos bias, already zeroed on the border
    inv = pack[:, H:H + 1]          # not_border / spatial normalizer
    border = pack[:, H + 1:H + 2]   # 1.0 on graph-token row/col

    # feature mean + per-hop head mix + hop sum, as a single native-bf16 MXU matmul
    acc = jnp.dot(edge_ref[...], w_ref[...], preferred_element_type=jnp.float32)

    out_ref[...] = border * t_ref[...] + spb + acc * inv


def massformer_graph_attn_bias(
    params, input_nodes, attn_bias, spatial_pos, input_edges, attn_edge_type,
    *, num_heads, multi_hop_max_dist, edge_type="multi_hop", block_m=8192,
):
    B, N = input_nodes.shape[:2]
    N1 = N + 1
    H = num_heads
    M = B * N1 * N1

    # ---------------- glue: gathers / padding / flattening ----------------
    # TODO(synk): next step is streaming integer edge indices + in-kernel table
    # lookup to cut the dominant HBM stream ~8-16x; kept out-of-kernel until the
    # in-kernel gather codegen is validated on hardware.
    sp_pad = jnp.pad(spatial_pos.astype(jnp.int32), ((0, 0), (1, 0), (1, 0)))   # (B,N1,N1)
    spb_pad = params["spatial_pos_encoder"].astype(jnp.bfloat16)[sp_pad]         # (B,N1,N1,H)

    ii = jnp.arange(N1)[:, None]
    jj = jnp.arange(N1)[None, :]
    border = ((ii == 0) | (jj == 0)).astype(jnp.float32)                         # (N1,N1)
    border_flat = jnp.broadcast_to(border[None], (B, N1, N1)).reshape(M, 1)
    not_border = 1.0 - border_flat

    if edge_type == "multi_hop":
        ie = input_edges
        if multi_hop_max_dist > 0:
            ie = ie[:, :, :, :multi_hop_max_dist, :]
        D, F = int(ie.shape[3]), int(ie.shape[4])
        ie_pad = jnp.pad(ie.astype(jnp.int32),
                         ((0, 0), (1, 0), (1, 0), (0, 0), (0, 0)))               # (B,N1,N1,D,F)
        edge_emb = params["edge_encoder"].astype(jnp.bfloat16)[ie_pad]           # (B,N1,N1,D,F,H)
        W = params["edge_dis_encoder"].astype(jnp.float32).reshape(-1, H, H)[:D] # (D,H,H)
        # fold the 1/F feature-mean into the stacked mixing matrix (repeated over F);
        # row order (d, f, h) matches the contiguous reshape of edge_emb below.
        W_stack = (jnp.broadcast_to(W[:, None, :, :], (D, F, H, H))
                   .reshape(D * F * H, H) * (1.0 / F)).astype(jnp.bfloat16)      # (D*F*H, H)
        # spatial normalizer (torch where/clamp semantics); border masked to zero
        sp_ = jnp.where(sp_pad == 0, 1, sp_pad)
        sp_ = jnp.where(sp_ > 1, sp_ - 1, sp_)
        if multi_hop_max_dist > 0:
            sp_ = jnp.clip(sp_, 0, multi_hop_max_dist)
        inv_flat = not_border / sp_.astype(jnp.float32).reshape(M, 1)
    else:
        aet = attn_edge_type.astype(jnp.int32)
        D, F = 1, int(aet.shape[-1])
        aet_pad = jnp.pad(aet, ((0, 0), (1, 0), (1, 0), (0, 0)))                 # (B,N1,N1,F)
        edge_emb = params["edge_encoder"].astype(jnp.bfloat16)[aet_pad]          # (B,N1,N1,F,H)
        W_stack = (jnp.tile(jnp.eye(H, dtype=jnp.float32), (F, 1))
                   * (1.0 / F)).astype(jnp.bfloat16)                             # (F*H, H)
        inv_flat = not_border                                                    # no divide

    DFH = D * F * H
    edge_flat = edge_emb.reshape(M, DFH)                    # bf16, contiguous, lane-dense

    # one packed per-row bf16 stream: [masked spatial bias (H), inv, border, pad]
    spb_masked = (spb_pad.reshape(M, H).astype(jnp.float32) * not_border).astype(jnp.bfloat16)
    pk = ((H + 2 + 7) // 8) * 8
    cols = [spb_masked, inv_flat.astype(jnp.bfloat16), border_flat.astype(jnp.bfloat16)]
    if pk > H + 2:
        cols.append(jnp.zeros((M, pk - H - 2), jnp.bfloat16))
    packed = jnp.concatenate(cols, axis=-1)                 # (M, pk) bf16

    t = params["graph_token_virtual_distance"].astype(jnp.float32).reshape(1, H)

    # ---- block size: biggest block under a ~24 MiB double-buffered VMEM budget
    #      (safe on v7x's 64 MiB/TC), but keep >= 2 grid steps when possible so
    #      the 1-D parallel grid shards across both TensorCores on v7x.
    dfh_pad = -(-DFH // 128) * 128
    per_row_vmem = 2 * (dfh_pad * 2 + 128 * 2 + 128 * 4)    # edge + packed + out, x2 buffers
    bm = block_m
    while bm > 512 and bm * per_row_vmem > (24 << 20):
        bm //= 2
    while bm > 512 and -(-M // bm) < 2:
        bm //= 2
    Mp = -(-M // bm) * bm
    pad = Mp - M
    if pad:
        packed = jnp.pad(packed, ((0, pad), (0, 0)))
        edge_flat = jnp.pad(edge_flat, ((0, pad), (0, 0)))
    vmem_limit = int(max(bm * per_row_vmem + (8 << 20), 32 << 20))

    cost = pl.CostEstimate(
        flops=2 * Mp * DFH * H,
        transcendentals=0,
        bytes_accessed=int(Mp * (DFH * 2 + pk * 2 + H * 4) + DFH * H * 2 + H * 4),
    )

    out_flat = pl.pallas_call(
        functools.partial(_graph_attn_bias_kernel, num_heads=H),
        out_shape=jax.ShapeDtypeStruct((Mp, H), jnp.float32),
        grid_spec=pltpu.PrefetchScalarGridSpec(
            num_scalar_prefetch=0,
            grid=(Mp // bm,),
            in_specs=[
                pl.BlockSpec((bm, pk), lambda m: (m, 0)),    # packed per-row side inputs (bf16)
                pl.BlockSpec((1, H), lambda m: (0, 0)),      # graph-token embedding (f32)
                pl.BlockSpec((bm, DFH), lambda m: (m, 0)),   # edge embeddings (bf16)
                pl.BlockSpec((DFH, H), lambda m: (0, 0)),    # stacked mixing weights (bf16)
            ],
            out_specs=pl.BlockSpec((bm, H), lambda m: (m, 0)),
        ),
        compiler_params=pltpu.CompilerParams(
            dimension_semantics=("parallel",),
            vmem_limit_bytes=vmem_limit),
        cost_estimate=cost,
    )(packed, t, edge_flat, W_stack)

    # TODO(synk): a lane-dense (H, M) output layout would make the stores dense and
    # the transpose below contiguous; kept row-major (M, H) to avoid an in-kernel
    # (bm, H) -> (H, bm) relayout until validated on hardware.
    out = out_flat[:M].reshape(B, N1, N1, H)
    # 2*attn_bias residual stays f32 and fuses with the layout transpose in XLA.
    return (jnp.transpose(out, (0, 3, 1, 2))
            + 2.0 * attn_bias.astype(jnp.float32)[:, None])  # (B, H, N+1, N+1)


# ---------------- pure-JAX reference (mirrors the PyTorch forward) ----------
def reference_forward(params, input_nodes, attn_bias, spatial_pos, input_edges,
                      attn_edge_type, *, num_heads, multi_hop_max_dist, edge_type):
    B, N = input_nodes.shape[:2]
    H = num_heads
    gab = jnp.repeat(attn_bias[:, None], H, axis=1)                              # (B,H,N1,N1)
    spb = params["spatial_pos_encoder"][spatial_pos].transpose(0, 3, 1, 2)       # (B,H,N,N)
    gab = gab.at[:, :, 1:, 1:].add(spb)
    t = params["graph_token_virtual_distance"].reshape(1, H, 1)
    gab = gab.at[:, :, 1:, 0].add(t)
    gab = gab.at[:, :, 0, :].add(t)
    if edge_type == "multi_hop":
        sp_ = jnp.where(spatial_pos == 0, 1, spatial_pos)
        sp_ = jnp.where(sp_ > 1, sp_ - 1, sp_)
        ie = input_edges
        if multi_hop_max_dist > 0:
            sp_ = jnp.clip(sp_, 0, multi_hop_max_dist)
            ie = ie[:, :, :, :multi_hop_max_dist, :]
        ie_emb = params["edge_encoder"][ie].mean(-2)                             # (B,N,N,D,H)
        D = ie_emb.shape[-2]
        flat = ie_emb.transpose(3, 0, 1, 2, 4).reshape(D, -1, H)
        W = params["edge_dis_encoder"].reshape(-1, H, H)[:D]
        flat = jnp.einsum("dmh,dhk->dmk", flat, W)
        ie_b = flat.reshape(D, B, N, N, H).transpose(1, 2, 3, 0, 4)
        ie_b = (ie_b.sum(-2) / sp_.astype(jnp.float32)[..., None]).transpose(0, 3, 1, 2)
    else:
        ie_b = params["edge_encoder"][attn_edge_type].mean(-2).transpose(0, 3, 1, 2)
    gab = gab.at[:, :, 1:, 1:].add(ie_b)
    gab = gab + attn_bias[:, None]
    return gab


if __name__ == "__main__":
    key = jax.random.PRNGKey(0)
    B, N, H = 2, 8, 8
    num_edges = 16            # edge_encoder table = num_edges + 1 rows
    num_spatial = 10
    num_edge_dis = 6
    multi_hop_max_dist = 5
    edge_type = "multi_hop"
    D_full, F = 7, 3

    ks = jax.random.split(key, 10)
    edge_encoder = 0.02 * jax.random.normal(ks[0], (num_edges + 1, H), jnp.float32)
    edge_encoder = edge_encoder.at[0].set(0.0)          # padding_idx=0
    edge_dis_encoder = 0.02 * jax.random.normal(ks[1], (num_edge_dis * H * H, 1), jnp.float32)
    spatial_pos_encoder = 0.02 * jax.random.normal(ks[2], (num_spatial, H), jnp.float32)
    spatial_pos_encoder = spatial_pos_encoder.at[0].set(0.0)   # padding_idx=0
    graph_token_virtual_distance = 0.02 * jax.random.normal(ks[3], (1, H), jnp.float32)
    params = {
        "edge_encoder": edge_encoder,
        "edge_dis_encoder": edge_dis_encoder,
        "spatial_pos_encoder": spatial_pos_encoder,
        "graph_token_virtual_distance": graph_token_virtual_distance,
    }

    input_nodes = jax.random.randint(ks[4], (B, N), 1, 5)
    attn_bias = jax.random.normal(ks[5], (B, N + 1, N + 1), jnp.float32)
    spatial_pos = jax.random.randint(ks[6], (B, N, N), 0, num_spatial)
    input_edges = jax.random.randint(ks[7], (B, N, N, D_full, F), 0, num_edges + 1)
    attn_edge_type = jax.random.randint(ks[8], (B, N, N, F), 0, num_edges + 1)

    out = massformer_graph_attn_bias(
        params, input_nodes, attn_bias, spatial_pos, input_edges, attn_edge_type,
        num_heads=H, multi_hop_max_dist=multi_hop_max_dist, edge_type=edge_type)
    out = jax.block_until_ready(out)

    ref = reference_forward(
        params, input_nodes, attn_bias, spatial_pos, input_edges, attn_edge_type,
        num_heads=H, multi_hop_max_dist=multi_hop_max_dist, edge_type=edge_type)

    assert out.shape == (B, H, N + 1, N + 1), out.shape
    # bf16 streamed inputs / bf16 MXU (f32 accumulation, f32 attn_bias residual)
    assert jnp.allclose(out, ref, atol=3e-3, rtol=3e-3), float(jnp.max(jnp.abs(out - ref)))
    print("KERNEL_OK")
</pallas_src>

<mosaic_0001>
module attributes {stable_mosaic.version = 11 : i64} {
  func.func @_graph_attn_bias_kernel(%arg0: i32, %arg1: memref<512x16xbf16, #tpu.memory_space<vmem>>, %arg2: memref<1x8xf32, #tpu.memory_space<vmem>>, %arg3: memref<512x120xbf16, #tpu.memory_space<vmem>>, %arg4: memref<120x8xbf16, #tpu.memory_space<vmem>>, %arg5: memref<512x8xf32, #tpu.memory_space<vmem>>) attributes {dimension_semantics = [#tpu.dimension_semantics<parallel>], iteration_bounds = array<i64: 1>, scalar_prefetch = 0 : i64, scratch_operands = 0 : i64, tpu.core_type = #tpu.core_type<tc>, window_params = [{transform_indices = @transform_0, window_bounds = array<i64: 512, 16>}, {pipeline_mode = #tpu.pipeline_mode<synchronous>, transform_indices = @transform_1, window_bounds = array<i64: 1, 8>}, {transform_indices = @transform_2, window_bounds = array<i64: 512, 120>}, {pipeline_mode = #tpu.pipeline_mode<synchronous>, transform_indices = @transform_3, window_bounds = array<i64: 120, 8>}, {transform_indices = @transform_4, window_bounds = array<i64: 512, 8>}]} {
    %c0 = arith.constant 0 : index
    %c0_0 = arith.constant 0 : index
    %0 = vector.load %arg1[%c0, %c0_0] : memref<512x16xbf16, #tpu.memory_space<vmem>>, vector<512x16xbf16>
    %1 = arith.extf %0 : vector<512x16xbf16> to vector<512x16xf32>
    %2 = vector.extract_strided_slice %1 {offsets = [0, 0], sizes = [512, 8], strides = [1, 1]} : vector<512x16xf32> to vector<512x8xf32>
    %3 = vector.extract_strided_slice %1 {offsets = [0, 8], sizes = [512, 1], strides = [1, 1]} : vector<512x16xf32> to vector<512x1xf32>
    %4 = vector.extract_strided_slice %1 {offsets = [0, 9], sizes = [512, 1], strides = [1, 1]} : vector<512x16xf32> to vector<512x1xf32>
    %c0_1 = arith.constant 0 : index
    %c0_2 = arith.constant 0 : index
    %5 = vector.load %arg3[%c0_1, %c0_2] : memref<512x120xbf16, #tpu.memory_space<vmem>>, vector<512x120xbf16>
    %c0_3 = arith.constant 0 : index
    %c0_4 = arith.constant 0 : index
    %6 = vector.load %arg4[%c0_3, %c0_4] : memref<120x8xbf16, #tpu.memory_space<vmem>>, vector<120x8xbf16>
    %cst = arith.constant dense<0.000000e+00> : vector<512x8xf32>
    %7 = tpu.matmul %5, %6, %cst {dimension_numbers = #tpu.dot_dimension_numbers<[1], [0], [0], [1], [0, 0, 1, 1], [], []>} : vector<512x120xbf16>, vector<120x8xbf16>, vector<512x8xf32> -> vector<512x8xf32>
    %c0_5 = arith.constant 0 : index
    %c0_6 = arith.constant 0 : index
    %8 = vector.load %arg2[%c0_5, %c0_6] : memref<1x8xf32, #tpu.memory_space<vmem>>, vector<1x8xf32>
    %9 = vector.broadcast %4 : vector<512x1xf32> to vector<512x8xf32>
    %10 = vector.broadcast %8 : vector<1x8xf32> to vector<512x8xf32>
    %11 = arith.mulf %9, %10 : vector<512x8xf32>
    %12 = arith.addf %11, %2 : vector<512x8xf32>
    %13 = vector.broadcast %3 : vector<512x1xf32> to vector<512x8xf32>
    %14 = arith.mulf %7, %13 : vector<512x8xf32>
    %15 = arith.addf %12, %14 : vector<512x8xf32>
    %c0_7 = arith.constant 0 : index
    %c0_8 = arith.constant 0 : index
    %16 = vector.load %arg5[%c0_7, %c0_8] : memref<512x8xf32, #tpu.memory_space<vmem>>, vector<512x8xf32>
    tpu.vector_store %arg5[%c0_7, %c0_8], %15 {strides = array<i32>} : memref<512x8xf32, #tpu.memory_space<vmem>>, vector<512x8xf32>,
    return
  }
  func.func @transform_0(%arg0: i32) -> (i32, i32) {
    %c0_i32 = arith.constant 0 : i32
    %c0_i32_0 = arith.constant 0 : i32
    return %arg0, %c0_i32 : i32, i32
  }
  func.func @transform_1(%arg0: i32) -> (i32, i32) {
    %c0_i32 = arith.constant 0 : i32
    %c0_i32_0 = arith.constant 0 : i32
    %c0_i32_1 = arith.constant 0 : i32
    return %c0_i32, %c0_i32_0 : i32, i32
  }
  func.func @transform_2(%arg0: i32) -> (i32, i32) {
    %c0_i32 = arith.constant 0 : i32
    %c0_i32_0 = arith.constant 0 : i32
    return %arg0, %c0_i32 : i32, i32
  }
  func.func @transform_3(%arg0: i32) -> (i32, i32) {
    %c0_i32 = arith.constant 0 : i32
    %c0_i32_0 = arith.constant 0 : i32
    %c0_i32_1 = arith.constant 0 : i32
    return %c0_i32, %c0_i32_0 : i32, i32
  }
  func.func @transform_4(%arg0: i32) -> (i32, i32) {
    %c0_i32 = arith.constant 0 : i32
    %c0_i32_0 = arith.constant 0 : i32
    return %arg0, %c0_i32 : i32, i32
  }
}

</mosaic_0001>

<bundles_post_ra>
// kernel: tpu_custom_call.1
= control target key start
LH: loop header
LB: loop body
LE: loop exit
PB: predicated region body
PF: predicated region fallthrough
CT: control target
= control target key end

     0   :  { %v2344_v0 = vmov 9   ;;  %vm526_vm0 = vcmask 1043456   ;;  %vm429_vm1 = vcmask 982016   ;;  %vm1535_vm2 = vcmask 64512   ;;  %s3775_s0 = inlined_call_operand.vmem [shape: bf16[512,16], index: 0, kind: input, shape index: {}]   ;;  %s3776_s3 = inlined_call_operand.vmem [shape: bf16[120,8], index: 3, kind: input, shape index: {}]   ;;  %s3777_s1 = inlined_call_operand.vmem [shape: f32[1,8], index: 1, kind: input, shape index: {}]   ;;  %s3778_s2 = inlined_call_operand.vmem [shape: bf16[512,120], index: 2, kind: input, shape index: {}]   ;;  %s3779_s4 = inlined_call_operand.vmem [shape: f32[512,8], index: 4, kind: output, shape index: {}]  }
   0x1   :  { %2038 = vset.pattern.permute.xlu2 %v2344_v0  ;;  %2027 = vset.pattern.permute.xlu1 %v2344_v0  ;;  %v2374_v1 = vld [vmem:[%s3775_s0 + $0x20] sm:$0xff]   ;;  %v2379_v2 = vld [vmem:[%s3775_s0 + $0x10] sm:$0xff]   ;;  %v223_v8 = vld [vmem:[%s3776_s3 + $0x38] sm:$0xf] }
   0x2   :  { %v2384_v3 = vld [vmem:[%s3775_s0] sm:$0xff]   ;;  %2016 = vset.pattern.permute.xlu0 %v2344_v0  ;;  %v3824_v4 = vunpack.c.l.bf16 %v2374_v1  ;;  %v3822_v5 = vunpack.c.h.bf16 %v2374_v1  ;;  %v3813_v6 = vunpack.c.l.bf16 %v2379_v2  ;;  %v3818_v7 = vunpack.c.h.bf16 %v2379_v2  ;;  %v2398_v12 = vld [vmem:[%s3775_s0 + $0x28] sm:$0xff]   ;;  %v2403_v13 = vld [vmem:[%s3775_s0 + $0x18] sm:$0xff]  }
   0x3   :  { %v3830_v9 = vunpack.c.l.bf16 %v2384_v3  ;;  %v3831_v10 = vunpack.c.h.bf16 %v2384_v3  ;;  %v413_v11 = vunpack.c.l.b16 %v223_v8  ;;  %v2420_v16 = vld [vmem:[%s3775_s0 + $0x8] sm:$0xff]   ;;  %v3821_v19 = vunpack.c.l.bf16 %v2398_v12  ;;  %v1830_v26 = vld [vmem:[%s3776_s3 + $0x30] sm:$0xff]  ;;  %v2461_v30 = vld [vmem:[%s3775_s0 + $0x40] sm:$0xff]  }
   0x4   :  { %v2409_v14 = vpack.i.bf16 %v3822_v5, %v3824_v4  ;;  %v2415_v15 = vpack.i.bf16 %v3818_v7, %v3813_v6  ;;  %v3801_v20 = vunpack.c.h.bf16 %v2398_v12  ;;  %v3808_v21 = vunpack.c.l.bf16 %v2403_v13  ;;  %v2466_v31 = vld [vmem:[%s3775_s0 + $0x38] sm:$0xff]   ;;  %v1829_v32 = vld [vmem:[%s3776_s3 + $0x28] sm:$0xff]  ;;  %v2474_v33 = vld [vmem:[%s3775_s0 + $0x30] sm:$0xff]  }
   0x5   :  { %v2426_v17 = vpack.i.bf16 %v3831_v10, %v3830_v9  ;;  %v421_v18 = vpack.c.b16 %v413_v11, %v413_v11  ;;  %v3800_v22 = vunpack.c.h.bf16 %v2403_v13  ;;  %v3807_v24 = vunpack.c.l.bf16 %v2420_v16  ;;  %v1828_v40 = vld [vmem:[%s3776_s3 + $0x20] sm:$0xff]  ;;  %v2509_v44 = vld [vmem:[%s3775_s0 + $0x58] sm:$0xff]   ;;  %v2514_v45 = vld [vmem:[%s3775_s0 + $0x50] sm:$0xff]  }
   0x6   :  { %2040 = vperm.xlu2 %2038, %v2409_v14   ;;  %2029 = vperm.xlu1 %2027, %v2415_v15   ;;  %v3809_v25 = vunpack.c.h.bf16 %v2420_v16  ;;  %v2444_v27 = vpack.i.bf16 %v3801_v20, %v3821_v19  ;;  %v3823_v34 = vunpack.c.l.bf16 %v2461_v30  ;;  %v3825_v35 = vunpack.c.h.bf16 %v2461_v30  ;;  %v1827_v46 = vld [vmem:[%s3776_s3 + $0x18] sm:$0xff]  ;;  %v2522_v47 = vld [vmem:[%s3775_s0 + $0x48] sm:$0xff]   ;;  %v1826_v54 = vld [vmem:[%s3776_s3 + $0x10] sm:$0xff] }
   0x7   :  { %2018 = vperm.xlu0 %2016, %v2426_v17   ;;  %v528_v23 = vsel %vm526_vm0, %v421_v18, 0  ;;  %v2450_v28 = vpack.i.bf16 %v3800_v22, %v3808_v21  ;;  %v3792_v36 = vunpack.c.l.bf16 %v2466_v31  ;;  %v3789_v37 = vunpack.c.h.bf16 %v2466_v31  ;;  %v2557_v58 = vld [vmem:[%s3775_s0 + $0x70] sm:$0xff]   ;;  %v2562_v59 = vld [vmem:[%s3775_s0 + $0x68] sm:$0xff]   ;;  %v2576_v8 = vld [vmem:[%s3775_s0 + $0x60] sm:$0xff]  }
   0x8   :  { %530 = vmatpush.bf16.msra.mxu0 %v528_v23  ;;  %1990 = vmatpush.bf16.msra.mxu1 %v528_v23  ;;  %v2456_v29 = vpack.i.bf16 %v3809_v25, %v3807_v24  ;;  %v3793_v38 = vunpack.c.l.bf16 %v2474_v33  ;;  %v3786_v39 = vunpack.c.h.bf16 %v2474_v33  ;;  %v2492_v41 = vpack.i.bf16 %v3825_v35, %v3823_v34  ;;  %v1825_v60 = vld [vmem:[%s3776_s3 + $0x8] sm:$0xff]  ;;  %v1824_v11 = vld [vmem:[%s3776_s3] sm:$0xff]  ;;  %v2705_v20 = vld [vmem:[%s3775_s0 + $0xb8] sm:$0xff]  }
   0x9   :  { %1991 = vmatpush.bf16.msra.mxu2 %v528_v23  ;;  %1992 = vmatpush.bf16.msra.mxu3 %v528_v23  ;;  %v2498_v42 = vpack.i.bf16 %v3789_v37, %v3792_v36  ;;  %v3810_v48 = vunpack.c.l.bf16 %v2509_v44  ;;  %v3806_v49 = vunpack.c.h.bf16 %v2509_v44  ;;  %v3782_v50 = vunpack.c.l.bf16 %v2514_v45  ;;  %v1801_v22 = vld [vmem:[%s3778_s2 + $0x48] sm:$0xff]  ;;  %3891 = vst [vmem:[#allocation6_spill] sm:$0xff] %v2705_v20  ;;  %v2779_v7 = vld [vmem:[%s3775_s0 + $0xc0] sm:$0xff]   ;;  %v1794_v19 = vld [vmem:[%s3778_s2 + $0x10] sm:$0xff] }
   0xa   :  { %v2504_v43 = vpack.i.bf16 %v3786_v39, %v3793_v38  ;;  %v3783_v51 = vunpack.c.h.bf16 %v2514_v45  ;;  %v3784_v52 = vunpack.c.l.bf16 %v2522_v47  ;;  %v3785_v53 = vunpack.c.h.bf16 %v2522_v47  ;;  %3896 = vst [vmem:[#allocation11_spill] sm:$0xff] %v2779_v7  ;;  %v1802_v4 = vld [vmem:[%s3778_s2 + $0x50] sm:$0xff]  ;;  %v2805_v35 = vld [vmem:[%s3775_s0 + $0xe8] sm:$0xff]  }
   0xb   :  { %v2540_v55 = vpack.i.bf16 %v3806_v49, %v3810_v48  ;;  %v3799_v61 = vunpack.c.l.bf16 %v2557_v58  ;;  %v3798_v62 = vunpack.c.h.bf16 %v2557_v58  ;;  %v3781_v63 = vunpack.c.l.bf16 %v2562_v59  ;;  %v2733_v48 = vld [vmem:[%s3775_s0 + $0xa8] sm:$0xff]   ;;  %3897 = vst [vmem:[#allocation12_spill] sm:$0xff] %v2805_v35 }
   0xc   :  { %531 = vmatpush.bf16.msra.mxu0 %v1830_v26  ;;  %1993 = vmatpush.bf16.msra.mxu1 %v1830_v26  ;;  %v2546_v56 = vpack.i.bf16 %v3783_v51, %v3782_v50  ;;  %v2552_v57 = vpack.i.bf16 %v3785_v53, %v3784_v52  ;;  %v3780_v0 = vunpack.c.h.bf16 %v2562_v59  ;;  %v3788_v18 = vunpack.c.l.bf16 %v2576_v8  ;;  %3893 = vst [vmem:[#allocation8_spill] sm:$0xff] %v2733_v48 }
   0xd   :  { %1994 = vmatpush.bf16.msra.mxu2 %v1830_v26  ;;  %1995 = vmatpush.bf16.msra.mxu3 %v1830_v26  ;;  %v3787_v23 = vunpack.c.h.bf16 %v2576_v8  ;;  %v1792_v26 = vld [vmem:[%s3778_s2] sm:$0xff]  ;;  %v3817_v49 = vunpack.c.l.bf16 %v2705_v20  ;;  %v3814_v24 = vunpack.c.h.bf16 %v2705_v20  ;;  %v3840_v9 = vunpack.c.l.bf16 %v2805_v35 }
   0xe   :  { %2045 = vperm.xlu2 %2038, %v2444_v27   ;;  %2034 = vperm.xlu1 %2027, %v2450_v28   ;;  %v3842_v10 = vunpack.c.h.bf16 %v2805_v35 }
   0xf   :  { %2023 = vperm.xlu0 %2016, %v2456_v29   ;;  %v2622_v50 = vpack.i.bf16 %v3787_v23, %v3788_v18  ;;  %v2746_v6 = vpack.i.bf16 %v3814_v24, %v3817_v49 }
  0x10   :  { %532 = vmatpush.bf16.msra.mxu0 %v1829_v32  ;;  %1996 = vmatpush.bf16.msra.mxu1 %v1829_v32 }
  0x11   :  { %1997 = vmatpush.bf16.msra.mxu2 %v1829_v32  ;;  %1998 = vmatpush.bf16.msra.mxu3 %v1829_v32  ;;  %v2591_v32 = vpack.i.bf16 %v3798_v62, %v3799_v61 }
  0x14   :  { %533 = vmatpush.bf16.msra.mxu0 %v1828_v40  ;;  %1999 = vmatpush.bf16.msra.mxu1 %v1828_v40 }
  0x15   :  { %2000 = vmatpush.bf16.msra.mxu2 %v1828_v40  ;;  %2001 = vmatpush.bf16.msra.mxu3 %v1828_v40  ;;  %v2597_v40 = vpack.i.bf16 %v3780_v0, %v3781_v63  ;;  %v1808_v0 = vld [vmem:[%s3778_s2 + $0x80] sm:$0xff] }
  0x16   :  { %2060 = vperm.xlu2 %2038, %v2492_v41   ;;  %2055 = vperm.xlu1 %2027, %v2498_v42   ;;  %v1816_v63 = vld [vmem:[%s3778_s2 + $0xc0] sm:$0xff] }
  0x17   :  { %2050 = vperm.xlu0 %2016, %v2504_v43  }
  0x18   :  { %534 = vmatpush.bf16.msra.mxu0 %v1827_v46  ;;  %2002 = vmatpush.bf16.msra.mxu1 %v1827_v46 }
  0x19   :  { %2003 = vmatpush.bf16.msra.mxu2 %v1827_v46  ;;  %2004 = vmatpush.bf16.msra.mxu3 %v1827_v46  ;;  %v1800_v46 = vld [vmem:[%s3778_s2 + $0x40] sm:$0xff] }
  0x1c   :  { %535 = vmatpush.bf16.msra.mxu0 %v1826_v54  ;;  %2005 = vmatpush.bf16.msra.mxu1 %v1826_v54 }
  0x1d   :  { %2006 = vmatpush.bf16.msra.mxu2 %v1826_v54  ;;  %2007 = vmatpush.bf16.msra.mxu3 %v1826_v54  ;;  %v2605_v54 = vld [vmem:[%s3775_s0 + $0x88] sm:$0xff]  }
  0x1e   :  { %2075 = vperm.xlu2 %2038, %v2540_v55   ;;  %2070 = vperm.xlu1 %2027, %v2546_v56   ;;  %v3794_v51 = vunpack.c.l.bf16 %v2605_v54  ;;  %v3797_v52 = vunpack.c.h.bf16 %v2605_v54 }
  0x1f   :  { %2065 = vperm.xlu0 %2016, %v2552_v57  }
  0x20   :  { %536 = vmatpush.bf16.msra.mxu0 %v1825_v60  ;;  %2008 = vmatpush.bf16.msra.mxu1 %v1825_v60  ;;  %v2646_v37 = vpack.i.bf16 %v3797_v52, %v3794_v51  ;;  %v2679_v51 = vld [vmem:[%s3775_s0 + $0x90] sm:$0xff]   ;;  %v1793_v52 = vld [vmem:[%s3778_s2 + $0x8] sm:$0xff] }
  0x21   :  { %2009 = vmatpush.bf16.msra.mxu2 %v1825_v60  ;;  %2010 = vmatpush.bf16.msra.mxu3 %v1825_v60  ;;  %v2610_v60 = vld [vmem:[%s3775_s0 + $0x80] sm:$0xff]   ;;  %3890 = vst [vmem:[#allocation5_spill] sm:$0xff] %v2679_v51 }
  0x22   :  { %3887 = vst [vmem:[#allocation2_spill] sm:$0xff] %v2610_v60  ;;  %v3790_v53 = vunpack.c.l.bf16 %v2610_v60  ;;  %v3791_v39 = vunpack.c.h.bf16 %v2610_v60 }
  0x24   :  { %537 = vmatpush.bf16.msra.mxu0 %v1824_v11  ;;  %2011 = vmatpush.bf16.msra.mxu1 %v1824_v11 }
  0x25   :  { %2012 = vmatpush.bf16.msra.mxu2 %v1824_v11  ;;  %2013 = vmatpush.bf16.msra.mxu3 %v1824_v11  ;;  %v2633_v11 = vld [vmem:[%s3775_s0 + $0x78] sm:$0xff]  }
  0x26   :  { %2090 = vperm.xlu2 %2038, %v2591_v32   ;;  %2085 = vperm.xlu1 %2027, %v2597_v40   ;;  %3888 = vst [vmem:[#allocation3_spill] sm:$0xff] %v2633_v11  ;;  %v3796_v23 = vunpack.c.l.bf16 %v2633_v11  ;;  %v3795_v18 = vunpack.c.h.bf16 %v2633_v11 }
  0x27   :  { %1760 = vmatmul.msk.bf16.vlgmr.msra.gmra.mxu0 %vm429_vm1, %v1792_v26  ;;  %1768 = vmatmul.msk.bf16.vlgmr.msra.gmra.mxu1 %vm429_vm1, %v1800_v46  ;;  %v2652_v26 = vpack.i.bf16 %v3791_v39, %v3790_v53 }
  0x28   :  { %1776 = vmatmul.msk.bf16.vlgmr.msra.gmra.mxu2 %vm429_vm1, %v1808_v0  ;;  %1784 = vmatmul.msk.bf16.vlgmr.msra.gmra.mxu3 %vm429_vm1, %v1816_v63  ;;  %v2657_v63 = vld [vmem:[%s3775_s0 + $0xa0] sm:$0xff]   ;;  %v2662_v0 = vld [vmem:[%s3775_s0 + $0x98] sm:$0xff]   ;;  %v2668_v46 = vpack.i.bf16 %v3795_v18, %v3796_v23  ;;  %v3811_v18 = vunpack.c.l.bf16 %v2679_v51  ;;  %v3812_v23 = vunpack.c.h.bf16 %v2679_v51 }
  0x29   :  { %2080 = vperm.xlu0 %2016, %v2622_v50   ;;  %3889 = vst [vmem:[#allocation4_spill] sm:$0xff] %v2662_v0  ;;  %v3803_v53 = vunpack.c.l.bf16 %v2657_v63  ;;  %v3802_v39 = vunpack.c.h.bf16 %v2657_v63  ;;  %v3804_v36 = vunpack.c.l.bf16 %v2662_v0  ;;  %v3805_v38 = vunpack.c.h.bf16 %v2662_v0 }
  0x2b   :  { %v2691_v62 = vpack.i.bf16 %v3802_v39, %v3803_v53  ;;  %v2697_v61 = vpack.i.bf16 %v3805_v38, %v3804_v36  ;;  %v2710_v39 = vld [vmem:[%s3775_s0 + $0xb0] sm:$0xff]   ;;  %v1809_v53 = vld [vmem:[%s3778_s2 + $0x88] sm:$0xff]  ;;  %v2722_v38 = vpack.i.bf16 %v3812_v23, %v3811_v18  ;;  %v3819_v18 = vunpack.c.l.bf16 %v2733_v48 }
  0x2c   :  { %3892 = vst [vmem:[#allocation7_spill] sm:$0xff] %v2710_v39  ;;  %v1817_v36 = vld [vmem:[%s3778_s2 + $0xc8] sm:$0xff]  ;;  %v3816_v21 = vunpack.c.l.bf16 %v2710_v39  ;;  %v3815_v25 = vunpack.c.h.bf16 %v2710_v39  ;;  %v3820_v23 = vunpack.c.h.bf16 %v2733_v48  ;;  %v2833_v39 = vld [vmem:[%s3775_s0 + $0xd8] sm:$0xff]  }
  0x2d   :  { %3899 = vst [vmem:[#allocation14_spill] sm:$0xff] %v2833_v39 }
  0x2e   :  { %2105 = vperm.xlu2 %2038, %v2646_v37   ;;  %2100 = vperm.xlu1 %2027, %v2652_v26  }
  0x31   :  { %2095 = vperm.xlu0 %2016, %v2668_v46  }
  0x36   :  { %2120 = vperm.xlu2 %2038, %v2691_v62   ;;  %2115 = vperm.xlu1 %2027, %v2697_v61  }
  0x37   :  { %1761 = vmatmul.msk.bf16.gmra.mxu0 %vm429_vm1, %v1793_v52  ;;  %1769 = vmatmul.msk.bf16.gmra.mxu1 %vm429_vm1, %v1801_v22  ;;  %v2752_v22 = vpack.i.bf16 %v3815_v25, %v3816_v21  ;;  %v2762_v52 = vld [vmem:[%s3775_s0 + $0xc8] sm:$0xff]  }
  0x38   :  { %1777 = vmatmul.msk.bf16.gmra.mxu2 %vm429_vm1, %v1809_v53  ;;  %1785 = vmatmul.msk.bf16.gmra.mxu3 %vm429_vm1, %v1817_v36  ;;  %v2757_v36 = vld [vmem:[%s3775_s0 + $0xd0] sm:$0xff]   ;;  %3895 = vst [vmem:[#allocation10_spill] sm:$0xff] %v2762_v52  ;;  %v2768_v53 = vpack.i.bf16 %v3820_v23, %v3819_v18  ;;  %v3828_v21 = vunpack.c.l.bf16 %v2762_v52  ;;  %v3829_v49 = vunpack.c.h.bf16 %v2762_v52  ;;  %v3838_v18 = vunpack.c.l.bf16 %v2779_v7 }
  0x39   :  { %2110 = vperm.xlu0 %2016, %v2722_v38   ;;  %3894 = vst [vmem:[#allocation9_spill] sm:$0xff] %v2757_v36  ;;  %v3826_v24 = vunpack.c.l.bf16 %v2757_v36  ;;  %v3827_v25 = vunpack.c.h.bf16 %v2757_v36  ;;  %v3839_v23 = vunpack.c.h.bf16 %v2779_v7  ;;  %v2846_v52 = vpack.i.bf16 %v3842_v10, %v3840_v9  ;;  %v1811_v10 = vld [vmem:[%s3778_s2 + $0x98] sm:$0xff] }
  0x3a   :  { %v2797_v34 = vpack.i.bf16 %v3829_v49, %v3828_v21  ;;  %v1818_v21 = vld [vmem:[%s3778_s2 + $0xd0] sm:$0xff]  ;;  %v2345_v7 = vmov 8  }
  0x3b   :  { %v2791_v5 = vpack.i.bf16 %v3827_v25, %v3826_v24  ;;  %v2810_v24 = vld [vmem:[%s3775_s0 + $0xe0] sm:$0xff]   ;;  %v1810_v25 = vld [vmem:[%s3778_s2 + $0x90] sm:$0xff]  ;;  %v2822_v49 = vpack.i.bf16 %v3839_v23, %v3838_v18  ;;  %v3843_v18 = vunpack.c.l.bf16 %v2833_v39  ;;  %v3844_v23 = vunpack.c.h.bf16 %v2833_v39  ;;  %v1803_v39 = vld [vmem:[%s3778_s2 + $0x58] sm:$0xff] }
  0x3c   :  { %3898 = vst [vmem:[#allocation13_spill] sm:$0xff] %v2810_v24  ;;  %v3841_v11 = vunpack.c.l.bf16 %v2810_v24 }
  0x3e   :  { %2135 = vperm.xlu2 %2038, %v2746_v6   ;;  %2130 = vperm.xlu1 %2027, %v2752_v22  }
  0x41   :  { %2125 = vperm.xlu0 %2016, %v2768_v53  }
  0x46   :  { %2150 = vperm.xlu2 %2038, %v2791_v5   ;;  %2145 = vperm.xlu1 %2027, %v2797_v34  }
  0x47   :  { %1762 = vmatmul.msk.bf16.gmra.mxu0 %vm429_vm1, %v1794_v19  ;;  %1770 = vmatmul.msk.bf16.gmra.mxu1 %vm429_vm1, %v1802_v4  ;;  %v3900_v4 = vunpack.c.h.bf16 %v2810_v24  ;;  %v1795_v24 = vld [vmem:[%s3778_s2 + $0x18] sm:$0xff] }
  0x48   :  { %1778 = vmatmul.msk.bf16.gmra.mxu2 %vm429_vm1, %v1810_v25  ;;  %1786 = vmatmul.msk.bf16.gmra.mxu3 %vm429_vm1, %v1818_v21  ;;  %v2857_v21 = vld [vmem:[%s3775_s0 + $0xf8] sm:$0xff]   ;;  %v2863_v25 = vpack.i.bf16 %v3844_v23, %v3843_v18 }
  0x49   :  { %2140 = vperm.xlu0 %2016, %v2822_v49   ;;  %v2852_v19 = vpack.i.bf16 %v3900_v4, %v3841_v11  ;;  %3901 = vst [vmem:[#allocation15_spill] sm:$0xff] %v2857_v21  ;;  %v3851_v9 = vunpack.c.l.bf16 %v2857_v21  ;;  %v3852_v4 = vunpack.c.h.bf16 %v2857_v21  ;;  %v2872_v11 = vld [vmem:[%s3775_s0 + $0xf0] sm:$0xff]   ;;  %v1819_v18 = vld [vmem:[%s3778_s2 + $0xd8] sm:$0xff] }
  0x4a   :  { %3902 = vst [vmem:[#allocation16_spill] sm:$0xff] %v2872_v11  ;;  %v3903_v21 = vunpack.c.l.bf16 %v2872_v11 }
  0x4b   :  { %v2881_v23 = vpack.i.bf16 %v3852_v4, %v3851_v9  ;;  %v3904_v9 = vunpack.c.h.bf16 %v2872_v11 }
  0x4d   :  { %v2899_v4 = vpack.i.bf16 %v3904_v9, %v3903_v21 }
  0x4e   :  { %2165 = vperm.xlu2 %2038, %v2846_v52   ;;  %2160 = vperm.xlu1 %2027, %v2852_v19  }
  0x51   :  { %2155 = vperm.xlu0 %2016, %v2863_v25  }
  0x56   :  { %2179 = vset.pattern.permute.xlu2 %v2345_v7  ;;  %2175 = vperm.xlu1 %2027, %v2881_v23  }
  0x57   :  { %1763 = vmatmul.msk.bf16.gmra.mxu0 %vm429_vm1, %v1795_v24  ;;  %1771 = vmatmul.msk.bf16.gmra.mxu1 %vm429_vm1, %v1803_v39  ;;  %v1804_v24 = vld [vmem:[%s3778_s2 + $0x60] sm:$0xff]  ;;  %v1821_v39 = vld [vmem:[%s3778_s2 + $0xe8] sm:$0xff] }
  0x58   :  { %1779 = vmatmul.msk.bf16.gmra.mxu2 %vm429_vm1, %v1811_v10  ;;  %1787 = vmatmul.msk.bf16.gmra.mxu3 %vm429_vm1, %v1819_v18  ;;  %v1796_v10 = vld [vmem:[%s3778_s2 + $0x20] sm:$0xff] }
  0x59   :  { %2170 = vperm.xlu0 %2016, %v2899_v4   ;;  %2181 = vperm.xlu2 %2179, %v2426_v17   ;;  %v1812_v17 = vld [vmem:[%s3778_s2 + $0xa0] sm:$0xff] }
  0x5e   :  { %2191 = vset.pattern.permute.xlu1 %v2345_v7 }
  0x5f   :  { %2193 = vperm.xlu1 %2191, %v2415_v15  }
  0x60   :  { %v2909_v9 = vpop.permute.xlu2 %2040 }
  0x61   :  { %2185 = vset.pattern.permute.xlu0 %v2345_v7  ;;  %2198 = vperm.xlu2 %2179, %v2450_v28   ;;  %v1820_v7 = vld [vmem:[%s3778_s2 + $0xe0] sm:$0xff] }
  0x62   :  { %2187 = vperm.xlu0 %2185, %v2456_v29   ;;  %v1797_v29 = vld [vmem:[%s3778_s2 + $0x28] sm:$0xff] }
  0x67   :  { %1764 = vmatmul.msk.bf16.gmra.mxu0 %vm429_vm1, %v1796_v10  ;;  %1772 = vmatmul.msk.bf16.gmra.mxu1 %vm429_vm1, %v1804_v24 }
  0x68   :  { %1780 = vmatmul.msk.bf16.gmra.mxu2 %vm429_vm1, %v1812_v17  ;;  %1788 = vmatmul.msk.bf16.gmra.mxu3 %vm429_vm1, %v1820_v7  ;;  %v2929_v15 = vpop.permute.xlu2 %2045 }
  0x69   :  { %2203 = vperm.xlu1 %2191, %v2409_v14   ;;  %2208 = vperm.xlu2 %2179, %v2444_v27   ;;  %v1805_v14 = vld [vmem:[%s3778_s2 + $0x68] sm:$0xff] }
  0x6a   :  { %2213 = vperm.xlu0 %2185, %v2504_v43   ;;  %v1813_v27 = vld [vmem:[%s3778_s2 + $0xa8] sm:$0xff] }
  0x70   :  { %v2934_v28 = vpop.permute.xlu2 %2060 }
  0x71   :  { %2218 = vperm.xlu1 %2191, %v2498_v42   ;;  %2223 = vperm.xlu2 %2179, %v2492_v41  }
  0x72   :  { %2228 = vperm.xlu0 %2185, %v2552_v57  }
  0x77   :  { %1765 = vmatmul.msk.bf16.gmra.mxu0 %vm429_vm1, %v1797_v29  ;;  %1773 = vmatmul.msk.bf16.gmra.mxu1 %vm429_vm1, %v1805_v14 }
  0x78   :  { %1781 = vmatmul.msk.bf16.gmra.mxu2 %vm429_vm1, %v1813_v27  ;;  %1789 = vmatmul.msk.bf16.gmra.mxu3 %vm429_vm1, %v1821_v39  ;;  %v2955_v41 = vpop.permute.xlu2 %2075  ;;  %v2957_v42 = vpop.permute.xlu1 %2029 }
  0x79   :  { %2233 = vperm.xlu1 %2191, %v2546_v56   ;;  %2238 = vperm.xlu2 %2179, %v2540_v55   ;;  %v2961_v43 = vpop.permute.xlu0 %2018  ;;  %v1798_v55 = vld [vmem:[%s3778_s2 + $0x30] sm:$0xff]  ;;  %v2032_v60 = vunpack.i.h.bf16 %v2957_v42  ;;  %v2031_v36 = vunpack.i.l.bf16 %v2957_v42 }
  0x7a   :  { %2243 = vperm.xlu0 %2185, %v2622_v50   ;;  %v1806_v50 = vld [vmem:[%s3778_s2 + $0x70] sm:$0xff] }
  0x7b   :  { %v1814_v56 = vld [vmem:[%s3778_s2 + $0xb0] sm:$0xff] }
  0x80   :  { %v2964_v57 = vpop.permute.xlu2 %2090  ;;  %v2966_v18 = vpop.permute.xlu1 %2034 }
  0x81   :  { %2248 = vperm.xlu1 %2191, %v2597_v40   ;;  %2253 = vperm.xlu2 %2179, %v2591_v32   ;;  %v2970_v21 = vpop.permute.xlu0 %2023  ;;  %v1822_v32 = vld [vmem:[%s3778_s2 + $0xf0] sm:$0xff] }
  0x82   :  { %2258 = vperm.xlu0 %2185, %v2668_v46  }
  0x87   :  { %1766 = vmatmul.msk.bf16.gmra.mxu0 %vm429_vm1, %v1798_v55  ;;  %1774 = vmatmul.msk.bf16.gmra.mxu1 %vm429_vm1, %v1806_v50 }
  0x88   :  { %1782 = vmatmul.msk.bf16.gmra.mxu2 %vm429_vm1, %v1814_v56  ;;  %1790 = vmatmul.msk.bf16.gmra.mxu3 %vm429_vm1, %v1822_v32  ;;  %v2989_v40 = vpop.permute.xlu2 %2105  ;;  %v2991_v46 = vpop.permute.xlu1 %2055  ;;  %v2021_v32 = vunpack.i.h.bf16 %v2961_v43 }
  0x89   :  { %2263 = vperm.xlu1 %2191, %v2652_v26   ;;  %2268 = vperm.xlu2 %2179, %v2646_v37   ;;  %v2995_v10 = vpop.permute.xlu0 %2050  ;;  %v1799_v37 = vld [vmem:[%s3778_s2 + $0x38] sm:$0xff] }
  0x8a   :  { %2273 = vperm.xlu0 %2185, %v2722_v38   ;;  %v1807_v38 = vld [vmem:[%s3778_s2 + $0x78] sm:$0xff] }
  0x8b   :  { %v1815_v26 = vld [vmem:[%s3778_s2 + $0xb8] sm:$0xff] }
  0x90   :  { %v2998_v24 = vpop.permute.xlu2 %2120  ;;  %v3000_v17 = vpop.permute.xlu1 %2070 }
  0x91   :  { %2278 = vperm.xlu1 %2191, %v2697_v61   ;;  %2283 = vperm.xlu2 %2179, %v2691_v62   ;;  %v3004_v7 = vpop.permute.xlu0 %2065  ;;  %v1823_v61 = vld [vmem:[%s3778_s2 + $0xf8] sm:$0xff] }
  0x92   :  { %2288 = vperm.xlu0 %2185, %v2768_v53  }
  0x97   :  { %1767 = vmatmul.msk.bf16.gmra.mxu0 %vm429_vm1, %v1799_v37  ;;  %1775 = vmatmul.msk.bf16.gmra.mxu1 %vm429_vm1, %v1807_v38  ;;  %v2020_v37 = vunpack.i.l.bf16 %v2961_v43 }
  0x98   :  { %1783 = vmatmul.msk.bf16.gmra.mxu2 %vm429_vm1, %v1815_v26  ;;  %1791 = vmatmul.msk.bf16.gmra.mxu3 %vm429_vm1, %v1823_v61  ;;  %v3023_v62 = vpop.permute.xlu2 %2135  ;;  %v3025_v53 = vpop.permute.xlu1 %2085 }
  0x99   :  { %3905 = vst [vmem:[#allocation17_spill] sm:$0xff] %v3023_v62  ;;  %2293 = vperm.xlu1 %2191, %v2752_v22   ;;  %2298 = vperm.xlu2 %2179, %v2746_v6  }
  0x9a   :  { %2303 = vperm.xlu0 %2185, %v2822_v49  }
  0x9b   :  { %v3030_v29 = vpop.permute.xlu0 %2080 }
  0xa0   :  { %v3032_v14 = vpop.permute.xlu2 %2150  ;;  %v3034_v27 = vpop.permute.xlu1 %2100 }
  0xa1   :  { %3906 = vst [vmem:[#allocation18_spill] sm:$0xff] %v3032_v14  ;;  %2308 = vperm.xlu1 %2191, %v2797_v34   ;;  %2313 = vperm.xlu2 %2179, %v2791_v5  }
  0xa2   :  { %3907 = vst [vmem:[#allocation19_spill] sm:$0xff] %v3034_v27  ;;  %2318 = vperm.xlu0 %2185, %v2863_v25   ;;  %v2078_v27 = vunpack.i.h.bf16 %v2955_v41 }
  0xa3   :  { %v3039_v39 = vpop.permute.xlu0 %2095 }
  0xa4   :  { %3908 = vst [vmem:[#allocation20_spill] sm:$0xff] %v3039_v39  ;;  %v539_v55 = vpop.f32.mrf.mxu0  ;;  %v3041_v22 = vpop.f32.mrf.mxu1 }
  0xa8   :  { %v3043_v6 = vpop.permute.xlu1 %2115  ;;  %v3048_v49 = vpop.permute.xlu2 %2165 }
  0xa9   :  { %3909 = vst [vmem:[#allocation21_spill] sm:$0xff] %v3043_v6  ;;  %2323 = vperm.xlu1 %2191, %v2852_v19   ;;  %2328 = vperm.xlu2 %2179, %v2846_v52   ;;  %v3065_v52 = vld [vmem:[%s3777_s1] ss:$0 sm:$0xff] }
  0xaa   :  { %2333 = vperm.xlu0 %2185, %v2899_v4   ;;  %3910 = vst [vmem:[#allocation22_spill] sm:$0xff] %v3048_v49  ;;  %v1024_v4 = vmul.f32 %v3065_v52, %v2021_v32  ;;  %v1023_v38 = vmul.f32 %v3065_v52, %v2020_v37  ;;  %v3919_v32 = vunpack.c.l.bf16 %v2384_v3 }
  0xab   :  { %v3050_v34 = vpop.permute.xlu0 %2110  ;;  %v3052_v5 = vpop.f32.mrf.mxu2 }
  0xac   :  { %3911 = vst [vmem:[#allocation23_spill] sm:$0xff] %v3050_v34  ;;  %v3054_v25 = vpop.f32.mrf.mxu3  ;;  %v541_v50 = vpop.f32.mrf.mxu0 }
  0xad   :  { %3912 = vst [vmem:[#allocation24_spill] sm:$0xff] %v3052_v5  ;;  %v3056_v56 = vpop.f32.mrf.mxu1  ;;  %v3918_v5 = vunpack.c.h.bf16 %v2384_v3 }
  0xae   :  { %3913 = vst [vmem:[#allocation25_spill] sm:$0xff] %v3054_v25 }
  0xb0   :  { %v3060_v19 = vpop.permute.xlu1 %2130 }
  0xb1   :  { %3914 = vst [vmem:[#allocation26_spill] sm:$0xff] %v3060_v19  ;;  %2338 = vperm.xlu1 %2191, %v2881_v23   ;;  %v1088_v23 = vadd.f32 %v3918_v5, %v1024_v4  ;;  %v1087_v19 = vadd.f32 %v3919_v32, %v1023_v38  ;;  %v2063_v38 = vunpack.i.h.bf16 %v2934_v28  ;;  %v2062_v32 = vunpack.i.l.bf16 %v2934_v28 }
  0xb3   :  { %v3070_v26 = vpop.permute.xlu0 %2125  ;;  %v3072_v61 = vpop.f32.mrf.mxu2 }
  0xb4   :  { %3915 = vst [vmem:[#allocation27_spill] sm:$0xff] %v3070_v26  ;;  %v3074_v11 = vpop.f32.mrf.mxu3  ;;  %v2182_v43 = vpop.permute.xlu2 %2181 }
  0xb5   :  { %3916 = vst [vmem:[#allocation28_spill] sm:$0xff] %v3072_v61  ;;  %v2184_v25 = vunpack.i.h.bf16 %v2182_v43  ;;  %v2183_v20 = vunpack.i.l.bf16 %v2182_v43  ;;  %v3076_v39 = vpop.f32.mrf.mxu0  ;;  %v3078_v48 = vpop.f32.mrf.mxu1 }
  0xb6   :  { %3917 = vst [vmem:[#allocation29_spill] sm:$0xff] %v3074_v11 }
  0xb7   :  { %v1408_v37 = vmul.f32 %v2184_v25, %v541_v50  ;;  %v1407_v51 = vmul.f32 %v2183_v20, %v539_v55 }
  0xb8   :  { %v3084_v0 = vpop.permute.xlu1 %2145 }
  0xb9   :  { %3920 = vst [vmem:[#allocation30_spill] sm:$0xff] %v3084_v0  ;;  %v1471_v61 = vadd.f32 %v1407_v51, %v1087_v19  ;;  %v1472_v11 = vadd.f32 %v1408_v37, %v1088_v23  ;;  %v2043_v37 = vunpack.i.h.bf16 %v2909_v9  ;;  %v1039_v0 = vmul.f32 %v3065_v52, %v2062_v32 }
  0xbb   :  { %1536 = vst.msk [vmem:[%s3779_s4] sm:$0xff] %vm1535_vm2, %v1471_v61  ;;  %v3090_v43 = vpop.permute.xlu0 %2140  ;;  %v3092_v35 = vpop.f32.mrf.mxu2 }
  0xbc   :  { %3921 = vst [vmem:[#allocation31_spill] sm:$0xff] %v3090_v43  ;;  %v3098_v3 = vpop.f32.mrf.mxu3  ;;  %v3100_v20 = vpop.permute.xlu2 %2198  ;;  %v1040_v43 = vmul.f32 %v3065_v52, %v2063_v38 }
  0xbd   :  { %1537 = vst.msk [vmem:[%s3779_s4 + $0x8] sm:$0xff] %vm1535_vm2, %v1472_v11  ;;  %v3102_v51 = vpop.f32.mrf.mxu0  ;;  %v3104_v55 = vpop.f32.mrf.mxu1  ;;  %v2042_v11 = vunpack.i.l.bf16 %v2909_v9  ;;  %v1032_v9 = vmul.f32 %v3065_v52, %v2043_v37  ;;  %v3934_v37 = vunpack.c.l.bf16 %v2374_v1 }
  0xbe   :  { %3922 = vst [vmem:[#allocation32_spill] sm:$0xff] %v3098_v3  ;;  %v2048_v3 = vunpack.i.h.bf16 %v2929_v15 }
  0xc0   :  { %v3106_v5 = vpop.permute.xlu1 %2160 }
  0xc1   :  { %3923 = vst [vmem:[#allocation33_spill] sm:$0xff] %v3106_v5 }
  0xc3   :  { %v3108_v25 = vpop.permute.xlu0 %2155  ;;  %v3110_v50 = vpop.f32.mrf.mxu2 }
  0xc4   :  { %3924 = vst [vmem:[#allocation34_spill] sm:$0xff] %v3108_v25  ;;  %v3112_v19 = vpop.f32.mrf.mxu3  ;;  %v3114_v4 = vpop.permute.xlu2 %2208  ;;  %v2047_v25 = vunpack.i.l.bf16 %v2929_v15  ;;  %v3137_v15 = vmul.f32 %v3065_v52, %v2048_v3  ;;  %v3935_v3 = vunpack.c.l.bf16 %v2461_v30 }
  0xc5   :  { %3925 = vst [vmem:[#allocation35_spill] sm:$0xff] %v3112_v19  ;;  %v549_v61 = vpop.f32.mrf.mxu0  ;;  %v3118_v23 = vpop.f32.mrf.mxu1  ;;  %v1031_v19 = vmul.f32 %v3065_v52, %v2042_v11  ;;  %v2077_v11 = vunpack.i.l.bf16 %v2955_v41 }
  0xc6   :  { %3926 = vst [vmem:[#allocation36_spill] sm:$0xff] %v3114_v4  ;;  %v3932_v4 = vunpack.c.h.bf16 %v2461_v30  ;;  %v3936_v30 = vunpack.c.h.bf16 %v2374_v1 }
  0xc7   :  { %3927 = vst [vmem:[#allocation37_spill] sm:$0xff] %v3118_v23  ;;  %v1027_v23 = vmul.f32 %v3065_v52, %v2031_v36  ;;  %v2092_v36 = vunpack.i.l.bf16 %v2964_v57 }
  0xc8   :  { %v3124_v5 = vpop.permute.xlu1 %2175  ;;  %v1104_v34 = vadd.f32 %v3932_v4, %v1040_v43  ;;  %v2036_v43 = vunpack.i.l.bf16 %v2966_v18  ;;  %v2026_v4 = vunpack.i.h.bf16 %v2970_v21 }
  0xc9   :  { %3928 = vst [vmem:[#allocation38_spill] sm:$0xff] %v3124_v5  ;;  %v1033_v5 = vmul.f32 %v3065_v52, %v2047_v25  ;;  %v1103_v25 = vadd.f32 %v3935_v3, %v1039_v0  ;;  %v3164_v0 = vadd.f32 %v3936_v30, %v1032_v9  ;;  %v2037_v3 = vunpack.i.h.bf16 %v2966_v18 }
  0xca   :  { %v3940_v9 = vunpack.c.l.bf16 %v2379_v2 }
  0xcb   :  { %v3131_v26 = vpop.permute.xlu0 %2170  ;;  %v3133_v28 = vpop.f32.mrf.mxu2 }
  0xcc   :  { %3929 = vst [vmem:[#allocation39_spill] sm:$0xff] %v3131_v26  ;;  %v3141_v38 = vpop.f32.mrf.mxu3  ;;  %v2224_v32 = vpop.permute.xlu2 %2223  ;;  %v1091_v30 = vadd.f32 %v3940_v9, %v1027_v23 }
  0xcd   :  { %3930 = vst [vmem:[#allocation40_spill] sm:$0xff] %v3133_v28  ;;  %v2226_v42 = vunpack.i.h.bf16 %v2224_v32  ;;  %v2225_v6 = vunpack.i.l.bf16 %v2224_v32  ;;  %v551_v26 = vpop.f32.mrf.mxu0  ;;  %v3145_v49 = vpop.f32.mrf.mxu1  ;;  %v3149_v28 = vadd.f32 %v3934_v37, %v1031_v19  ;;  %v1045_v19 = vmul.f32 %v3065_v52, %v2077_v11 }
  0xce   :  { %3931 = vst [vmem:[#allocation41_spill] sm:$0xff] %v3141_v38  ;;  %v1028_v38 = vmul.f32 %v3065_v52, %v2032_v60  ;;  %v2025_v37 = vunpack.i.l.bf16 %v2970_v21  ;;  %v3937_v60 = vunpack.c.l.bf16 %v2398_v12 }
  0xcf   :  { %3933 = vst [vmem:[#allocation42_spill] sm:$0xff] %v3145_v49  ;;  %v1424_v32 = vmul.f32 %v2226_v42, %v3056_v56  ;;  %v1423_v49 = vmul.f32 %v2225_v6, %v3041_v22  ;;  %v1046_v22 = vmul.f32 %v3065_v52, %v2078_v27  ;;  %v3939_v6 = vunpack.c.h.bf16 %v2379_v2 }
  0xd0   :  { %v3168_v41 = vadd.f32 %v3937_v60, %v1033_v5  ;;  %v1029_v5 = vmul.f32 %v3065_v52, %v2036_v43  ;;  %v1026_v60 = vmul.f32 %v3065_v52, %v2026_v4  ;;  %v1025_v27 = vmul.f32 %v3065_v52, %v2025_v37 }
  0xd1   :  { %v1488_v14 = vadd.f32 %v1424_v32, %v1104_v34  ;;  %v1487_v56 = vadd.f32 %v1423_v49, %v1103_v25  ;;  %v2194_v42 = vpop.permute.xlu1 %2193  ;;  %v1092_v21 = vadd.f32 %v3939_v6, %v1028_v38  ;;  %v3943_v38 = vunpack.c.l.bf16 %v2509_v44 }
  0xd2   :  { %3938 = vst [vmem:[#allocation43_spill] sm:$0xff] %v3168_v41  ;;  %v2196_v11 = vunpack.i.h.bf16 %v2194_v42  ;;  %v2195_v1 = vunpack.i.l.bf16 %v2194_v42  ;;  %v2200_v41 = vunpack.i.l.bf16 %v3100_v20  ;;  %v2093_v43 = vunpack.i.h.bf16 %v2964_v57 }
  0xd3   :  { %1553 = vst.msk [vmem:[%s3779_s4 + $0x88] sm:$0xff] %vm1535_vm2, %v1488_v14  ;;  %v3184_v18 = vpop.f32.mrf.mxu2  ;;  %v1109_v25 = vadd.f32 %v3943_v38, %v1045_v19  ;;  %v1051_v14 = vmul.f32 %v3065_v52, %v2092_v36  ;;  %v1030_v4 = vmul.f32 %v3065_v52, %v2037_v3  ;;  %v3946_v36 = vunpack.c.l.bf16 %v2420_v16 }
  0xd4   :  { %3941 = vst [vmem:[#allocation44_spill] sm:$0xff] %v3184_v18  ;;  %v3191_v2 = vpop.f32.mrf.mxu3  ;;  %v1412_v49 = vmul.f32 %v2196_v11, %v551_v26  ;;  %v1411_v34 = vmul.f32 %v2195_v1, %v549_v61  ;;  %v2239_v23 = vpop.permute.xlu2 %2238  ;;  %v3944_v26 = vunpack.c.h.bf16 %v2420_v16  ;;  %v3945_v11 = vunpack.c.l.bf16 %v2403_v13 }
  0xd5   :  { %1552 = vst.msk [vmem:[%s3779_s4 + $0x80] sm:$0xff] %vm1535_vm2, %v1487_v56  ;;  %v2240_v32 = vunpack.i.l.bf16 %v2239_v23  ;;  %v2188_v37 = vpop.permute.xlu0 %2187  ;;  %v554_v42 = vpop.f32.mrf.mxu0  ;;  %v1089_v38 = vadd.f32 %v3946_v36, %v1025_v27  ;;  %v2108_v3 = vunpack.i.h.bf16 %v2989_v40  ;;  %v2052_v27 = vunpack.i.l.bf16 %v2995_v10 }
  0xd6   :  { %3942 = vst [vmem:[#allocation45_spill] sm:$0xff] %v3191_v2  ;;  %v1475_v6 = vadd.f32 %v1411_v34, %v1091_v30  ;;  %v1476_v9 = vadd.f32 %v1412_v49, %v1092_v21  ;;  %v2190_v56 = vunpack.i.h.bf16 %v2188_v37  ;;  %v2189_v18 = vunpack.i.l.bf16 %v2188_v37  ;;  %v594_v2 = vpop.f32.mrf.mxu1 }
  0xd7   :  { %v1090_v61 = vadd.f32 %v3944_v26, %v1026_v60  ;;  %v1093_v19 = vadd.f32 %v3945_v11, %v1029_v5  ;;  %v1413_v1 = vmul.f32 %v2200_v41, %v554_v42  ;;  %v1429_v57 = vmul.f32 %v2240_v32, %v594_v2 }
  0xd8   :  { %1540 = vst.msk [vmem:[%s3779_s4 + $0x20] sm:$0xff] %vm1535_vm2, %v1475_v6  ;;  %v1410_v21 = vmul.f32 %v2190_v56, %v3102_v51  ;;  %v1409_v30 = vmul.f32 %v2189_v18, %v3076_v39  ;;  %v2107_v60 = vunpack.i.l.bf16 %v2989_v40  ;;  %v2058_v5 = vunpack.i.h.bf16 %v2991_v46 }
  0xd9   :  { %v2057_v41 = vunpack.i.l.bf16 %v2991_v46  ;;  %1541 = vst.msk [vmem:[%s3779_s4 + $0x28] sm:$0xff] %vm1535_vm2, %v1476_v9  ;;  %v1477_v16 = vadd.f32 %v1413_v1, %v1093_v19  ;;  %v1493_v34 = vadd.f32 %v1429_v57, %v1109_v25  ;;  %v1052_v51 = vmul.f32 %v3065_v52, %v2093_v43 }
  0xda   :  { %v1473_v2 = vadd.f32 %v1409_v30, %v1089_v38  ;;  %v1474_v49 = vadd.f32 %v1410_v21, %v1090_v61  ;;  %v2053_v39 = vunpack.i.h.bf16 %v2995_v10  ;;  %v3947_v18 = vunpack.c.h.bf16 %v2509_v44 }
  0xdb   :  { %1542 = vst.msk [vmem:[%s3779_s4 + $0x30] sm:$0xff] %vm1535_vm2, %v1477_v16  ;;  %v3225_v40 = vpop.f32.mrf.mxu2  ;;  %v3227_v46 = vpop.permute.xlu1 %2203  ;;  %v3948_v37 = vunpack.c.h.bf16 %v2398_v12  ;;  %v1058_v43 = vmul.f32 %v3065_v52, %v2108_v3  ;;  %v2201_v10 = vunpack.i.h.bf16 %v3100_v20  ;;  %v3949_v44 = vunpack.c.h.bf16 %v2403_v13 }
  0xdc   :  { %v1110_v32 = vadd.f32 %v3947_v18, %v1046_v22  ;;  %1538 = vst.msk [vmem:[%s3779_s4 + $0x10] sm:$0xff] %vm1535_vm2, %v1473_v2  ;;  %v3242_v42 = vpop.f32.mrf.mxu3  ;;  %v3244_v6 = vpop.permute.xlu2 %2253  ;;  %v3950_v12 = vunpack.c.l.bf16 %v2557_v58  ;;  %v1057_v9 = vmul.f32 %v3065_v52, %v2107_v60  ;;  %v1038_v20 = vmul.f32 %v3065_v52, %v2058_v5 }
  0xdd   :  { %v3234_v25 = vadd.f32 %v3948_v37, %v3137_v15  ;;  %v1094_v22 = vadd.f32 %v3949_v44, %v1030_v4  ;;  %v2068_v56 = vunpack.i.h.bf16 %v3004_v7  ;;  %v2241_v26 = vunpack.i.h.bf16 %v2239_v23  ;;  %1539 = vst.msk [vmem:[%s3779_s4 + $0x18] sm:$0xff] %vm1535_vm2, %v1474_v49  ;;  %v3259_v61 = vpop.permute.xlu0 %2213  ;;  %v556_v13 = vpop.f32.mrf.mxu0 }
  0xde   :  { %v3250_v15 = vadd.f32 %v3950_v12, %v1051_v14  ;;  %v1037_v4 = vmul.f32 %v3065_v52, %v2057_v41  ;;  %v1035_v14 = vmul.f32 %v3065_v52, %v2052_v27  ;;  %v2067_v11 = vunpack.i.l.bf16 %v3004_v7  ;;  %1558 = vst.msk [vmem:[%s3779_s4 + $0xb0] sm:$0xff] %vm1535_vm2, %v1493_v34  ;;  %v596_v19 = vpop.f32.mrf.mxu1 }
  0xdf   :  { %v1414_v23 = vmul.f32 %v2201_v10, %v556_v13  ;;  %v1036_v1 = vmul.f32 %v3065_v52, %v2053_v39  ;;  %v2123_v57 = vunpack.i.h.bf16 %v2998_v24  ;;  %v2122_v36 = vunpack.i.l.bf16 %v2998_v24 }
  0xe0   :  { %v1430_v38 = vmul.f32 %v2241_v26, %v596_v19  ;;  %v2073_v3 = vunpack.i.h.bf16 %v3000_v17  ;;  %v2072_v21 = vunpack.i.l.bf16 %v3000_v17  ;;  %v3951_v7 = vunpack.c.h.bf16 %v2557_v58 }
  0xe1   :  { %v1478_v30 = vadd.f32 %v1414_v23, %v1094_v22  ;;  %v3952_v5 = vunpack.c.h.bf16 %v2605_v54  ;;  %v3953_v16 = vunpack.c.l.bf16 %v2605_v54  ;;  %v1042_v2 = vmul.f32 %v3065_v52, %v2068_v56 }
  0xe2   :  { %v3275_v60 = vadd.f32 %v3951_v7, %v1052_v51  ;;  %v1494_v49 = vadd.f32 %v1430_v38, %v1110_v32  ;;  %v1041_v24 = vmul.f32 %v3065_v52, %v2067_v11  ;;  %v3954_v58 = vunpack.c.l.bf16 %v2474_v33 }
  0xe3   :  { %v1122_v41 = vadd.f32 %v3952_v5, %v1058_v43  ;;  %v1121_v27 = vadd.f32 %v3953_v16, %v1057_v9  ;;  %1543 = vst.msk [vmem:[%s3779_s4 + $0x38] sm:$0xff] %vm1535_vm2, %v1478_v30  ;;  %v3955_v34 = vunpack.c.l.bf16 %v2466_v31  ;;  %v3956_v54 = vunpack.c.h.bf16 %v2466_v31  ;;  %v3306_v43 = vpop.f32.mrf.mxu2  ;;  %v3308_v10 = vpop.permute.xlu1 %2218 }
  0xe4   :  { %v3289_v17 = vadd.f32 %v3954_v58, %v1035_v14  ;;  %v1064_v18 = vmul.f32 %v3065_v52, %v2123_v57  ;;  %v1063_v32 = vmul.f32 %v3065_v52, %v2122_v36  ;;  %v2087_v37 = vunpack.i.l.bf16 %v3025_v53  ;;  %1559 = vst.msk [vmem:[%s3779_s4 + $0xb8] sm:$0xff] %vm1535_vm2, %v1494_v49  ;;  %v3318_v56 = vpop.f32.mrf.mxu3  ;;  %v2269_v26 = vpop.permute.xlu2 %2268 }
  0xe5   :  { %v3293_v51 = vadd.f32 %v3955_v34, %v1037_v4  ;;  %v3297_v39 = vadd.f32 %v3956_v54, %v1038_v20  ;;  %v3958_v44 = vunpack.c.h.bf16 %v2474_v33  ;;  %v1044_v22 = vmul.f32 %v3065_v52, %v2073_v3  ;;  %v2229_v23 = vpop.permute.xlu0 %2228  ;;  %v559_v19 = vpop.f32.mrf.mxu0 }
  0xe6   :  { %v1043_v12 = vmul.f32 %v3065_v52, %v2072_v21  ;;  %v2082_v9 = vunpack.i.l.bf16 %v3030_v29  ;;  %v2205_v20 = vunpack.i.l.bf16 %v3227_v46  ;;  %v3959_v13 = vunpack.c.h.bf16 %v2522_v47  ;;  %v599_v21 = vpop.f32.mrf.mxu1 }
  0xe7   :  { %3957 = vst [vmem:[#allocation46_spill] sm:$0xff] %v3297_v39  ;;  %v3312_v31 = vadd.f32 %v3958_v44, %v1036_v1  ;;  %v2083_v14 = vunpack.i.h.bf16 %v3030_v29  ;;  %v2271_v11 = vunpack.i.h.bf16 %v2269_v26  ;;  %v2270_v33 = vunpack.i.l.bf16 %v2269_v26 }
  0xe8   :  { %v1106_v4 = vadd.f32 %v3959_v13, %v1042_v2  ;;  %v3960_v1 = vunpack.c.l.bf16 %v2522_v47  ;;  %v2231_v36 = vunpack.i.h.bf16 %v2229_v23  ;;  %v2230_v38 = vunpack.i.l.bf16 %v2229_v23  ;;  %v3968_v23 = vld [vmem:[#allocation18_spill] sm:$0xff] }
  0xe9   :  { %v1415_v3 = vmul.f32 %v2205_v20, %v559_v19  ;;  %v2088_v30 = vunpack.i.h.bf16 %v3025_v53  ;;  %v1049_v7 = vmul.f32 %v3065_v52, %v2087_v37  ;;  %v1442_v5 = vmul.f32 %v2271_v11, %v3110_v50 }
  0xea   :  { %v1105_v57 = vadd.f32 %v3960_v1, %v1041_v24  ;;  %v1441_v16 = vmul.f32 %v2270_v33, %v3092_v35  ;;  %v1047_v29 = vmul.f32 %v3065_v52, %v2082_v9  ;;  %v1426_v2 = vmul.f32 %v2231_v36, %v3104_v55 }
  0xeb   :  { %v1425_v49 = vmul.f32 %v2230_v38, %v3078_v48  ;;  %v1479_v47 = vadd.f32 %v1415_v3, %v3149_v28  ;;  %v3961_v24 = vunpack.c.l.bf16 %v2657_v63  ;;  %v1048_v34 = vmul.f32 %v3065_v52, %v2083_v14  ;;  %v3970_v3 = vld [vmem:[#allocation42_spill] sm:$0xff]  ;;  %v4001_v48 = vld [vmem:[#allocation40_spill] sm:$0xff] }
  0xec   :  { %v1506_v53 = vadd.f32 %v1442_v5, %v1122_v41  ;;  %v1505_v54 = vadd.f32 %v1441_v16, %v1121_v27  ;;  %v3962_v37 = vunpack.c.h.bf16 %v2514_v45  ;;  %v3963_v35 = vunpack.c.l.bf16 %v2514_v45  ;;  %v639_v45 = vpop.f32.mrf.mxu2  ;;  %v2234_v41 = vpop.permute.xlu1 %2233 }
  0xed   :  { %v1127_v58 = vadd.f32 %v3961_v24, %v1063_v32  ;;  %v1489_v9 = vadd.f32 %v1425_v49, %v1105_v57  ;;  %v1490_v20 = vadd.f32 %v1426_v2, %v1106_v4  ;;  %1544 = vst.msk [vmem:[%s3779_s4 + $0x40] sm:$0xff] %vm1535_vm2, %v1479_v47  ;;  %v2137_v55 = vunpack.i.l.bf16 %v3023_v62  ;;  %v3361_v26 = vpop.f32.mrf.mxu3  ;;  %v2284_v14 = vpop.permute.xlu2 %2283  ;;  %v3972_v49 = vld [vmem:[#allocation19_spill] sm:$0xff]  ;;  %v4002_v62 = vld [vmem:[#allocation8_spill] sm:$0xff] }
  0xee   :  { %v1108_v50 = vadd.f32 %v3962_v37, %v1044_v22  ;;  %v1107_v44 = vadd.f32 %v3963_v35, %v1043_v12  ;;  %v3347_v28 = vmul.f32 %v3065_v52, %v2088_v30  ;;  %1571 = vst.msk [vmem:[%s3779_s4 + $0x118] sm:$0xff] %vm1535_vm2, %v1506_v53  ;;  %v3964_v27 = vunpack.c.h.bf16 %v2657_v63  ;;  %v2244_v1 = vpop.permute.xlu0 %2243  ;;  %v561_v57 = vpop.f32.mrf.mxu0 }
  0xef   :  { %v3965_v22 = vunpack.c.l.bf16 %v2576_v8  ;;  %1570 = vst.msk [vmem:[%s3779_s4 + $0x110] sm:$0xff] %vm1535_vm2, %v1505_v54  ;;  %v2236_v13 = vunpack.i.h.bf16 %v2234_v41  ;;  %v2235_v4 = vunpack.i.l.bf16 %v2234_v41  ;;  %v3967_v11 = vunpack.c.l.bf16 %v2562_v59 }
  0xf0   :  { %v1128_v32 = vadd.f32 %v3964_v27, %v1064_v18  ;;  %3966 = vst [vmem:[#allocation47_spill] sm:$0xff] %v3361_v26  ;;  %v2153_v63 = vunpack.i.h.bf16 %v3968_v23  ;;  %v2206_v18 = vunpack.i.h.bf16 %v3227_v46  ;;  %v2285_v19 = vunpack.i.l.bf16 %v2284_v14 }
  0xf1   :  { %v1111_v12 = vadd.f32 %v3965_v22, %v1047_v29  ;;  %v3365_v33 = vadd.f32 %v3967_v11, %v1049_v7  ;;  %1554 = vst.msk [vmem:[%s3779_s4 + $0x90] sm:$0xff] %vm1535_vm2, %v1489_v9  ;;  %v3969_v36 = vunpack.c.h.bf16 %v2576_v8  ;;  %v1428_v30 = vmul.f32 %v2236_v13, %v3970_v3  ;;  %v3971_v7 = vld [vmem:[#allocation37_spill] sm:$0xff]  ;;  %v601_v29 = vpop.f32.mrf.mxu1  ;;  %v3973_v9 = vld [vmem:[#allocation22_spill] sm:$0xff] }
  0xf2   :  { %1555 = vst.msk [vmem:[%s3779_s4 + $0x98] sm:$0xff] %vm1535_vm2, %v1490_v20  ;;  %v1427_v46 = vmul.f32 %v2235_v4, %v3971_v7  ;;  %v2246_v5 = vunpack.i.h.bf16 %v2244_v1  ;;  %v2245_v16 = vunpack.i.l.bf16 %v2244_v1  ;;  %v2152_v2 = vunpack.i.l.bf16 %v3968_v23  ;;  %v3974_v22 = vld [vmem:[#allocation21_spill] sm:$0xff] }
  0xf3   :  { %v1112_v38 = vadd.f32 %v3969_v36, %v1048_v34  ;;  %v2103_v47 = vunpack.i.h.bf16 %v3972_v49  ;;  %v1447_v24 = vmul.f32 %v2285_v19, %v639_v45  ;;  %v1416_v53 = vmul.f32 %v2206_v18, %v561_v57 }
  0xf4   :  { %v1491_v8 = vadd.f32 %v1427_v46, %v1107_v44  ;;  %v1492_v34 = vadd.f32 %v1428_v30, %v1108_v50  ;;  %v1431_v54 = vmul.f32 %v2245_v16, %v599_v21  ;;  %v1432_v37 = vmul.f32 %v2246_v5, %v601_v29  ;;  %v3975_v44 = vld [vmem:[#allocation23_spill] sm:$0xff]  ;;  %v641_v18 = vpop.f32.mrf.mxu2  ;;  %v3399_v19 = vpop.permute.xlu1 %2248 }
  0xf5   :  { %v2102_v35 = vunpack.i.l.bf16 %v3972_v49  ;;  %v2168_v20 = vunpack.i.h.bf16 %v3973_v9  ;;  %v2167_v41 = vunpack.i.l.bf16 %v3973_v9  ;;  %v1511_v27 = vadd.f32 %v1447_v24, %v1127_v58  ;;  %v3407_v57 = vpop.f32.mrf.mxu3  ;;  %v3410_v3 = vpop.permute.xlu2 %2298 }
  0xf6   :  { %v2118_v13 = vunpack.i.h.bf16 %v3974_v22  ;;  %1556 = vst.msk [vmem:[%s3779_s4 + $0xa0] sm:$0xff] %vm1535_vm2, %v1491_v8  ;;  %v2286_v45 = vunpack.i.h.bf16 %v2284_v14  ;;  %v1495_v4 = vadd.f32 %v1431_v54, %v1111_v12  ;;  %v1480_v50 = vadd.f32 %v1416_v53, %v3164_v0  ;;  %v3976_v12 = vld [vmem:[#allocation36_spill] sm:$0xff]  ;;  %v3420_v46 = vpop.permute.xlu0 %2258  ;;  %v564_v5 = vpop.f32.mrf.mxu0 }
  0xf7   :  { %v2117_v21 = vunpack.i.l.bf16 %v3974_v22  ;;  %v2113_v11 = vunpack.i.h.bf16 %v3975_v44  ;;  %v2112_v23 = vunpack.i.l.bf16 %v3975_v44  ;;  %1557 = vst.msk [vmem:[%s3779_s4 + $0xa8] sm:$0xff] %vm1535_vm2, %v1492_v34  ;;  %v1496_v58 = vadd.f32 %v1432_v37, %v1112_v38 }
  0xf8   :  { %v1076_v14 = vmul.f32 %v3065_v52, %v2153_v63  ;;  %v2210_v1 = vunpack.i.l.bf16 %v3976_v12  ;;  %1576 = vst.msk [vmem:[%s3779_s4 + $0x140] sm:$0xff] %vm1535_vm2, %v1511_v27  ;;  %v1448_v0 = vmul.f32 %v2286_v45, %v641_v18  ;;  %v2250_v36 = vunpack.i.l.bf16 %v3399_v19  ;;  %v3980_v27 = vld [vmem:[#allocation9_spill] sm:$0xff]  ;;  %v3986_v18 = vld [vmem:[#allocation12_spill] sm:$0xff] }
  0xf9   :  { %v1075_v38 = vmul.f32 %v3065_v52, %v2152_v2  ;;  %v1056_v30 = vmul.f32 %v3065_v52, %v2103_v47  ;;  %v1055_v63 = vmul.f32 %v3065_v52, %v2102_v35  ;;  %v1082_v7 = vmul.f32 %v3065_v52, %v2168_v20  ;;  %1560 = vst.msk [vmem:[%s3779_s4 + $0xc0] sm:$0xff] %vm1535_vm2, %v1495_v4  ;;  %v604_v47 = vpop.f32.mrf.mxu1  ;;  %v3978_v35 = vld [vmem:[#allocation43_spill] sm:$0xff] }
  0xfa   :  { %v1081_v16 = vmul.f32 %v3065_v52, %v2167_v41  ;;  %v1062_v29 = vmul.f32 %v3065_v52, %v2118_v13  ;;  %1545 = vst.msk [vmem:[%s3779_s4 + $0x48] sm:$0xff] %vm1535_vm2, %v1480_v50  ;;  %v1512_v2 = vadd.f32 %v1448_v0, %v1128_v32  ;;  %v1417_v49 = vmul.f32 %v2210_v1, %v564_v5  ;;  %v3977_v32 = vld [vmem:[#allocation27_spill] sm:$0xff] }
  0xfb   :  { %v1061_v24 = vmul.f32 %v3065_v52, %v2117_v21  ;;  %v1060_v53 = vmul.f32 %v3065_v52, %v2113_v11  ;;  %v1059_v8 = vmul.f32 %v3065_v52, %v2112_v23  ;;  %1561 = vst.msk [vmem:[%s3779_s4 + $0xc8] sm:$0xff] %vm1535_vm2, %v1496_v58  ;;  %v1433_v34 = vmul.f32 %v2250_v36, %v604_v47  ;;  %v3983_v21 = vld [vmem:[#allocation2_spill] sm:$0xff] }
  0xfc   :  { %v3438_v54 = vmul.f32 %v3065_v52, %v2137_v55  ;;  %v2128_v37 = vunpack.i.h.bf16 %v3977_v32  ;;  %1577 = vst.msk [vmem:[%s3779_s4 + $0x148] sm:$0xff] %vm1535_vm2, %v1512_v2  ;;  %v1481_v9 = vadd.f32 %v1417_v49, %v3978_v35  ;;  %v3979_v20 = vunpack.c.h.bf16 %v2562_v59  ;;  %v3489_v49 = vpop.f32.mrf.mxu2  ;;  %v2264_v47 = vpop.permute.xlu1 %2263 }
  0xfd   :  { %v3981_v22 = vunpack.c.h.bf16 %v3980_v27  ;;  %v3982_v55 = vunpack.c.l.bf16 %v3980_v27  ;;  %v2127_v4 = vunpack.i.l.bf16 %v3977_v32  ;;  %v1497_v50 = vadd.f32 %v1433_v34, %v3365_v33  ;;  %v3989_v33 = vld [vmem:[#allocation4_spill] sm:$0xff] }
  0xfe   :  { %v3449_v41 = vadd.f32 %v3979_v20, %v3347_v28  ;;  %v3984_v44 = vunpack.c.h.bf16 %v3983_v21  ;;  %v3985_v23 = vunpack.c.l.bf16 %v3983_v21  ;;  %v3987_v59 = vunpack.c.h.bf16 %v3986_v18  ;;  %1546 = vst.msk [vmem:[%s3779_s4 + $0x50] sm:$0xff] %vm1535_vm2, %v1481_v9  ;;  %v2314_v20 = vpop.permute.xlu2 %2313  ;;  %v566_v21 = vpop.f32.mrf.mxu0 }
  0xff   :  { %v1140_v13 = vadd.f32 %v3981_v22, %v1076_v14  ;;  %v1139_v45 = vadd.f32 %v3982_v55, %v1075_v38  ;;  %v3988_v1 = vunpack.c.l.bf16 %v3986_v18  ;;  %v3990_v0 = vunpack.c.h.bf16 %v3989_v33  ;;  %1562 = vst.msk [vmem:[%s3779_s4 + $0xd0] sm:$0xff] %vm1535_vm2, %v1497_v50  ;;  %v2274_v55 = vpop.permute.xlu0 %2273  ;;  %v3996_v50 = vld [vmem:[#allocation28_spill] sm:$0xff] }
 0x100   :  { %v1120_v11 = vadd.f32 %v3984_v44, %v1056_v30  ;;  %v1119_v58 = vadd.f32 %v3985_v23, %v1055_v63  ;;  %v3463_v28 = vadd.f32 %v3987_v59, %v1082_v7  ;;  %v3991_v38 = vunpack.c.l.bf16 %v3989_v33  ;;  %v3992_v63 = vld [vmem:[#allocation5_spill] sm:$0xff]  ;;  %v3997_v23 = vld [vmem:[#allocation24_spill] sm:$0xff] }
 0x101   :  { %v3467_v14 = vadd.f32 %v3988_v1, %v1081_v16  ;;  %v3475_v36 = vadd.f32 %v3990_v0, %v1062_v29  ;;  %v3993_v7 = vunpack.c.h.bf16 %v3992_v63  ;;  %v3994_v2 = vunpack.c.l.bf16 %v3992_v63  ;;  %v3995_v29 = vld [vmem:[#allocation26_spill] sm:$0xff]  ;;  %v606_v33 = vpop.f32.mrf.mxu1  ;;  %v3998_v0 = vld [vmem:[#allocation45_spill] sm:$0xff] }
 0x102   :  { %v3479_v30 = vadd.f32 %v3991_v38, %v1061_v24  ;;  %v2132_v34 = vunpack.i.l.bf16 %v3995_v29  ;;  %v1066_v32 = vmul.f32 %v3065_v52, %v2128_v37  ;;  %v684_v24 = vpop.f32.mrf.mxu3  ;;  %v2266_v35 = vunpack.i.h.bf16 %v2264_v47  ;;  %v3999_v63 = vld [vmem:[#allocation41_spill] sm:$0xff] }
 0x103   :  { %v1124_v5 = vadd.f32 %v3993_v7, %v1060_v53  ;;  %v1123_v16 = vadd.f32 %v3994_v2, %v1059_v8  ;;  %v2265_v9 = vunpack.i.l.bf16 %v2264_v47  ;;  %v1065_v53 = vmul.f32 %v3065_v52, %v2127_v4  ;;  %v4000_v47 = vld [vmem:[#allocation44_spill] sm:$0xff] }
 0x104   :  { %v2211_v8 = vunpack.i.h.bf16 %v3976_v12  ;;  %v2316_v27 = vunpack.i.h.bf16 %v2314_v20  ;;  %v2315_v22 = vunpack.i.l.bf16 %v2314_v20  ;;  %v1440_v44 = vmul.f32 %v2266_v35, %v3996_v50 }
 0x105   :  { %v1439_v18 = vmul.f32 %v2265_v9, %v3997_v23  ;;  %v2276_v59 = vunpack.i.h.bf16 %v2274_v55  ;;  %v2275_v1 = vunpack.i.l.bf16 %v2274_v55  ;;  %v2251_v37 = vunpack.i.h.bf16 %v3399_v19 }
 0x106   :  { %v1460_v38 = vmul.f32 %v2316_v27, %v3998_v0  ;;  %v1459_v7 = vmul.f32 %v2315_v22, %v3999_v63  ;;  %v1418_v4 = vmul.f32 %v2211_v8, %v566_v21  ;;  %v1504_v12 = vadd.f32 %v1440_v44, %v1120_v11  ;;  %v2329_v44 = vpop.permute.xlu2 %2328 }
 0x107   :  { %v1503_v2 = vadd.f32 %v1439_v18, %v1119_v58  ;;  %v1444_v20 = vmul.f32 %v2276_v59, %v4000_v47  ;;  %v1443_v39 = vmul.f32 %v2275_v1, %v4001_v48  ;;  %v2133_v35 = vunpack.i.h.bf16 %v3995_v29  ;;  %v4005_v48 = vld [vmem:[#allocation30_spill] sm:$0xff] }
 0x108   :  { %v1524_v50 = vadd.f32 %v1460_v38, %v1140_v13  ;;  %v1523_v9 = vadd.f32 %v1459_v7, %v1139_v45  ;;  %v1434_v23 = vmul.f32 %v2251_v37, %v606_v33  ;;  %v1067_v55 = vmul.f32 %v3065_v52, %v2132_v34  ;;  %v4006_v45 = vld [vmem:[#allocation31_spill] sm:$0xff]  ;;  %1569 = vst.msk [vmem:[%s3779_s4 + $0x108] sm:$0xff] %vm1535_vm2, %v1504_v12  ;;  %v2289_v33 = vpop.permute.xlu0 %2288  ;;  %v569_v37 = vpop.f32.mrf.mxu0 }
 0x109   :  { %v4003_v19 = vunpack.c.h.bf16 %v4002_v62  ;;  %v4004_v27 = vunpack.c.l.bf16 %v4002_v62  ;;  %1568 = vst.msk [vmem:[%s3779_s4 + $0x100] sm:$0xff] %vm1535_vm2, %v1503_v2  ;;  %v1507_v11 = vadd.f32 %v1443_v39, %v1123_v16  ;;  %v2148_v58 = vunpack.i.h.bf16 %v4005_v48  ;;  %v646_v62 = vpop.f32.mrf.mxu2  ;;  %v609_v7 = vpop.f32.mrf.mxu1 }
 0x10a   :  { %v2147_v13 = vunpack.i.l.bf16 %v4005_v48  ;;  %v2143_v29 = vunpack.i.h.bf16 %v4006_v45  ;;  %v1508_v34 = vadd.f32 %v1444_v20, %v1124_v5  ;;  %1589 = vst.msk [vmem:[%s3779_s4 + $0x1a8] sm:$0xff] %vm1535_vm2, %v1524_v50  ;;  %v1482_v39 = vadd.f32 %v1418_v4, %v3234_v25  ;;  %v686_v16 = vpop.f32.mrf.mxu3 }
 0x10b   :  { %v1130_v26 = vadd.f32 %v4003_v19, %v1066_v32  ;;  %v1129_v22 = vadd.f32 %v4004_v27, %v1065_v53  ;;  %v2279_v32 = vpop.permute.xlu1 %2278  ;;  %v2142_v53 = vunpack.i.l.bf16 %v4006_v45  ;;  %v2215_v18 = vunpack.i.l.bf16 %v3259_v61  ;;  %1588 = vst.msk [vmem:[%s3779_s4 + $0x1a0] sm:$0xff] %vm1535_vm2, %v1523_v9  ;;  %v4007_v19 = vld [vmem:[#allocation20_spill] sm:$0xff]  ;;  %v4010_v45 = vld [vmem:[#allocation7_spill] sm:$0xff] }
 0x10c   :  { %v2281_v8 = vunpack.i.h.bf16 %v2279_v32  ;;  %v2280_v21 = vunpack.i.l.bf16 %v2279_v32  ;;  %v1498_v5 = vadd.f32 %v1434_v23, %v3449_v41  ;;  %v2331_v59 = vunpack.i.h.bf16 %v2329_v44  ;;  %1572 = vst.msk [vmem:[%s3779_s4 + $0x120] sm:$0xff] %vm1535_vm2, %v1507_v11 }
 0x10d   :  { %v2330_v1 = vunpack.i.l.bf16 %v2329_v44  ;;  %v2291_v38 = vunpack.i.h.bf16 %v2289_v33  ;;  %v2290_v63 = vunpack.i.l.bf16 %v2289_v33  ;;  %v2255_v4 = vunpack.i.l.bf16 %v3244_v6  ;;  %1573 = vst.msk [vmem:[%s3779_s4 + $0x128] sm:$0xff] %vm1535_vm2, %v1508_v34 }
 0x10e   :  { %v1446_v25 = vmul.f32 %v2281_v8, %v3306_v43  ;;  %v1445_v0 = vmul.f32 %v2280_v21, %v3225_v40  ;;  %v1466_v41 = vmul.f32 %v2331_v59, %v686_v16  ;;  %v1419_v12 = vmul.f32 %v2215_v18, %v569_v37  ;;  %1547 = vst.msk [vmem:[%s3779_s4 + $0x58] sm:$0xff] %vm1535_vm2, %v1482_v39  ;;  %v4012_v8 = vld [vmem:[#allocation11_spill] sm:$0xff]  ;;  %v4015_v37 = vld [vmem:[#allocation33_spill] sm:$0xff] }
 0x10f   :  { %v1465_v2 = vmul.f32 %v2330_v1, %v684_v24  ;;  %v1450_v47 = vmul.f32 %v2291_v38, %v646_v62  ;;  %v1449_v20 = vmul.f32 %v2290_v63, %v3489_v49  ;;  %v1072_v50 = vmul.f32 %v3065_v52, %v2143_v29  ;;  %1563 = vst.msk [vmem:[%s3779_s4 + $0xd8] sm:$0xff] %vm1535_vm2, %v1498_v5  ;;  %v4008_v49 = vld [vmem:[#allocation6_spill] sm:$0xff] }
 0x110   :  { %v1509_v40 = vadd.f32 %v1445_v0, %v3479_v30  ;;  %v1510_v43 = vadd.f32 %v1446_v25, %v3475_v36  ;;  %v1530_v24 = vadd.f32 %v1466_v41, %v3463_v28  ;;  %v1435_v23 = vmul.f32 %v2255_v4, %v609_v7  ;;  %v571_v18 = vpop.f32.mrf.mxu0  ;;  %v4016_v0 = vld [vmem:[#allocation34_spill] sm:$0xff]  ;;  %v4017_v7 = vld [vmem:[#allocation29_spill] sm:$0xff] }
 0x111   :  { %v1529_v9 = vadd.f32 %v1465_v2, %v3467_v14  ;;  %v2098_v27 = vunpack.i.h.bf16 %v4007_v19  ;;  %v2097_v30 = vunpack.i.l.bf16 %v4007_v19  ;;  %v1513_v36 = vadd.f32 %v1449_v20, %v1129_v22  ;;  %v649_v32 = vpop.f32.mrf.mxu2  ;;  %v611_v1 = vpop.f32.mrf.mxu1  ;;  %v4018_v41 = vld [vmem:[#allocation25_spill] sm:$0xff] }
 0x112   :  { %1574 = vst.msk [vmem:[%s3779_s4 + $0x130] sm:$0xff] %vm1535_vm2, %v1509_v40  ;;  %v4009_v11 = vunpack.c.l.bf16 %v4008_v49  ;;  %v1068_v28 = vmul.f32 %v3065_v52, %v2133_v35  ;;  %v4011_v14 = vunpack.c.l.bf16 %v4010_v45  ;;  %v1071_v34 = vmul.f32 %v3065_v52, %v2142_v53 }
 0x113   :  { %1575 = vst.msk [vmem:[%s3779_s4 + $0x138] sm:$0xff] %vm1535_vm2, %v1510_v43  ;;  %v1514_v62 = vadd.f32 %v1450_v47, %v1130_v26  ;;  %v2294_v22 = vpop.permute.xlu1 %2293  ;;  %v1074_v39 = vmul.f32 %v3065_v52, %v2148_v58  ;;  %v1483_v35 = vadd.f32 %v1419_v12, %v3289_v17  ;;  %v1073_v16 = vmul.f32 %v3065_v52, %v2147_v13  ;;  %v2304_v58 = vpop.permute.xlu0 %2303 }
 0x114   :  { %v3565_v48 = vadd.f32 %v4009_v11, %v3438_v54  ;;  %v1131_v29 = vadd.f32 %v4011_v14, %v1067_v55  ;;  %v2216_v54 = vunpack.i.h.bf16 %v3259_v61  ;;  %1595 = vst.msk [vmem:[%s3779_s4 + $0x1d8] sm:$0xff] %vm1535_vm2, %v1530_v24  ;;  %v3582_v55 = vpop.f32.mrf.mxu3  ;;  %v2295_v53 = vunpack.i.l.bf16 %v2294_v22 }
 0x115   :  { %v4013_v26 = vunpack.c.h.bf16 %v4012_v8  ;;  %v2256_v44 = vunpack.i.h.bf16 %v3244_v6  ;;  %1594 = vst.msk [vmem:[%s3779_s4 + $0x1d0] sm:$0xff] %vm1535_vm2, %v1529_v9  ;;  %v1499_v61 = vadd.f32 %v1435_v23, %v3250_v15  ;;  %v2306_v13 = vunpack.i.h.bf16 %v2304_v58  ;;  %v4019_v23 = vld [vmem:[#allocation10_spill] sm:$0xff] }
 0x116   :  { %1578 = vst.msk [vmem:[%s3779_s4 + $0x150] sm:$0xff] %vm1535_vm2, %v1513_v36  ;;  %v1451_v17 = vmul.f32 %v2295_v53, %v649_v32  ;;  %v2305_v5 = vunpack.i.l.bf16 %v2304_v58  ;;  %v1420_v59 = vmul.f32 %v2216_v54, %v571_v18  ;;  %v4014_v6 = vunpack.c.l.bf16 %v4012_v8 }
 0x117   :  { %v1136_v21 = vadd.f32 %v4013_v26, %v1072_v50  ;;  %v2163_v25 = vunpack.i.h.bf16 %v4015_v37  ;;  %v2158_v38 = vunpack.i.h.bf16 %v4016_v0  ;;  %1579 = vst.msk [vmem:[%s3779_s4 + $0x158] sm:$0xff] %vm1535_vm2, %v1514_v62  ;;  %v1436_v15 = vmul.f32 %v2256_v44, %v611_v1 }
 0x118   :  { %v1135_v33 = vadd.f32 %v4014_v6, %v1071_v34  ;;  %1548 = vst.msk [vmem:[%s3779_s4 + $0x60] sm:$0xff] %vm1535_vm2, %v1483_v35  ;;  %v1515_v63 = vadd.f32 %v1451_v17, %v1131_v29  ;;  %v1456_v4 = vmul.f32 %v2306_v13, %v4017_v7  ;;  %v1455_v2 = vmul.f32 %v2305_v5, %v4018_v41  ;;  %v574_v8 = vpop.f32.mrf.mxu0  ;;  %v4025_v13 = vld [vmem:[#allocation14_spill] sm:$0xff] }
 0x119   :  { %v1484_v12 = vadd.f32 %v1420_v59, %v3312_v31  ;;  %v3613_v40 = vmul.f32 %v3065_v52, %v2098_v27  ;;  %v1053_v43 = vmul.f32 %v3065_v52, %v2097_v30  ;;  %v2162_v47 = vunpack.i.l.bf16 %v4015_v37  ;;  %1564 = vst.msk [vmem:[%s3779_s4 + $0xe0] sm:$0xff] %vm1535_vm2, %v1499_v61  ;;  %v651_v14 = vpop.f32.mrf.mxu2  ;;  %v4024_v61 = vld [vmem:[#allocation32_spill] sm:$0xff]  ;;  %v614_v17 = vpop.f32.mrf.mxu1  ;;  %v4027_v37 = vld [vmem:[#allocation39_spill] sm:$0xff] }
 0x11a   :  { %v2157_v20 = vunpack.i.l.bf16 %v4016_v0  ;;  %v2296_v50 = vunpack.i.h.bf16 %v2294_v22  ;;  %1580 = vst.msk [vmem:[%s3779_s4 + $0x160] sm:$0xff] %vm1535_vm2, %v1515_v63  ;;  %v1519_v31 = vadd.f32 %v1455_v2, %v1135_v33  ;;  %v1520_v24 = vadd.f32 %v1456_v4, %v1136_v21  ;;  %v4023_v21 = vld [vmem:[#allocation35_spill] sm:$0xff] }
 0x11b   :  { %v1500_v9 = vadd.f32 %v1436_v15, %v3275_v60  ;;  %v4020_v19 = vunpack.c.h.bf16 %v4019_v23  ;;  %v4021_v30 = vunpack.c.l.bf16 %v4019_v23  ;;  %v1078_v11 = vmul.f32 %v3065_v52, %v2158_v38  ;;  %1549 = vst.msk [vmem:[%s3779_s4 + $0x68] sm:$0xff] %vm1535_vm2, %v1484_v12  ;;  %v2309_v62 = vpop.permute.xlu1 %2308  ;;  %v4029_v2 = vld [vmem:[#allocation3_spill] sm:$0xff] }
 0x11c   :  { %v4022_v29 = vunpack.c.h.bf16 %v4010_v45  ;;  %v1080_v60 = vmul.f32 %v3065_v52, %v2163_v25  ;;  %1584 = vst.msk [vmem:[%s3779_s4 + $0x180] sm:$0xff] %vm1535_vm2, %v1519_v31  ;;  %v1452_v32 = vmul.f32 %v2296_v50, %v651_v14  ;;  %v3643_v22 = vpop.f32.mrf.mxu3  ;;  %v2310_v54 = vunpack.i.l.bf16 %v2309_v62 }
 0x11d   :  { %v1138_v27 = vadd.f32 %v4020_v19, %v1074_v39  ;;  %v1137_v36 = vadd.f32 %v4021_v30, %v1073_v16  ;;  %v2311_v39 = vunpack.i.h.bf16 %v2309_v62  ;;  %v1079_v35 = vmul.f32 %v3065_v52, %v2162_v47  ;;  %1585 = vst.msk [vmem:[%s3779_s4 + $0x188] sm:$0xff] %vm1535_vm2, %v1520_v24  ;;  %v2319_v16 = vpop.permute.xlu0 %2318 }
 0x11e   :  { %v1132_v34 = vadd.f32 %v4022_v29, %v1068_v28  ;;  %v1077_v53 = vmul.f32 %v3065_v52, %v2157_v20  ;;  %v2220_v45 = vunpack.i.l.bf16 %v3308_v10  ;;  %v2260_v28 = vunpack.i.l.bf16 %v3420_v46  ;;  %1565 = vst.msk [vmem:[%s3779_s4 + $0xe8] sm:$0xff] %vm1535_vm2, %v1500_v9  ;;  %v4031_v20 = vld [vmem:[#allocation13_spill] sm:$0xff] }
 0x11f   :  { %v1458_v44 = vmul.f32 %v2311_v39, %v4023_v21  ;;  %v1457_v58 = vmul.f32 %v2310_v54, %v4024_v61  ;;  %v2321_v18 = vunpack.i.h.bf16 %v2319_v16  ;;  %v4026_v5 = vunpack.c.h.bf16 %v4025_v13 }
 0x120   :  { %v1516_v26 = vadd.f32 %v1452_v32, %v1132_v34  ;;  %v2320_v1 = vunpack.i.l.bf16 %v2319_v16  ;;  %v1421_v6 = vmul.f32 %v2220_v45, %v574_v8  ;;  %v1437_v33 = vmul.f32 %v2260_v28, %v614_v17  ;;  %v4035_v16 = vld [vmem:[#allocation47_spill] sm:$0xff]  ;;  %v4038_v17 = vld [vmem:[#allocation16_spill] sm:$0xff] }
 0x121   :  { %v1142_v59 = vadd.f32 %v4026_v5, %v1078_v11  ;;  %v2173_v25 = vunpack.i.h.bf16 %v4027_v37  ;;  %v1521_v0 = vadd.f32 %v1457_v58, %v1137_v36  ;;  %v1522_v38 = vadd.f32 %v1458_v44, %v1138_v27  ;;  %v654_v36 = vpop.f32.mrf.mxu2 }
 0x122   :  { %1581 = vst.msk [vmem:[%s3779_s4 + $0x168] sm:$0xff] %vm1535_vm2, %v1516_v26  ;;  %v1462_v15 = vmul.f32 %v2321_v18, %v3318_v56  ;;  %v4028_v63 = vunpack.c.l.bf16 %v4025_v13  ;;  %v2172_v4 = vunpack.i.l.bf16 %v4027_v37  ;;  %v1461_v41 = vmul.f32 %v2320_v1, %v3242_v42  ;;  %v4034_v42 = vld [vmem:[#allocation38_spill] sm:$0xff]  ;;  %v4036_v26 = vld [vmem:[#allocation17_spill] sm:$0xff] }
 0x123   :  { %v4030_v12 = vunpack.c.l.bf16 %v4029_v2  ;;  %v4032_v50 = vunpack.c.h.bf16 %v4031_v20  ;;  %v2300_v24 = vunpack.i.l.bf16 %v3410_v3  ;;  %1586 = vst.msk [vmem:[%s3779_s4 + $0x190] sm:$0xff] %vm1535_vm2, %v1521_v0  ;;  %v1485_v9 = vadd.f32 %v1421_v6, %v3293_v51  ;;  %v2324_v11 = vpop.permute.xlu1 %2323 }
 0x124   :  { %v1141_v7 = vadd.f32 %v4028_v63, %v1077_v53  ;;  %v1526_v56 = vadd.f32 %v1462_v15, %v1142_v59  ;;  %v4033_v23 = vunpack.c.l.bf16 %v4031_v20  ;;  %v2178_v27 = vunpack.i.h.bf16 %v4034_v42  ;;  %1587 = vst.msk [vmem:[%s3779_s4 + $0x198] sm:$0xff] %vm1535_vm2, %v1522_v38  ;;  %v694_v29 = vpop.f32.mrf.mxu3  ;;  %v576_v53 = vpop.f32.mrf.mxu0  ;;  %v2343_v59 = vld [vmem:[%s3777_s1] ss:$0 sm:$0xff] }
 0x125   :  { %v1117_v47 = vadd.f32 %v4030_v12, %v1053_v43  ;;  %v1144_v31 = vadd.f32 %v4032_v50, %v1080_v60  ;;  %v1084_v14 = vmul.f32 %v3065_v52, %v2173_v25  ;;  %v1453_v51 = vmul.f32 %v2300_v24, %v654_v36  ;;  %1550 = vst.msk [vmem:[%s3779_s4 + $0x70] sm:$0xff] %vm1535_vm2, %v1485_v9  ;;  %v4042_v63 = vld [vmem:[#allocation46_spill] sm:$0xff]  ;;  %v4044_v50 = vld [vmem:[#allocation15_spill] sm:$0xff] }
 0x126   :  { %v1143_v19 = vadd.f32 %v4033_v23, %v1079_v35  ;;  %v1525_v43 = vadd.f32 %v1461_v41, %v1141_v7  ;;  %1591 = vst.msk [vmem:[%s3779_s4 + $0x1b8] sm:$0xff] %vm1535_vm2, %v1526_v56  ;;  %v2326_v34 = vunpack.i.h.bf16 %v2324_v11  ;;  %v2325_v62 = vunpack.i.l.bf16 %v2324_v11  ;;  %v2334_v35 = vpop.permute.xlu0 %2333 }
 0x127   :  { %v1501_v30 = vadd.f32 %v1437_v33, %v1117_v47  ;;  %v2177_v60 = vunpack.i.l.bf16 %v4034_v42  ;;  %v1083_v32 = vmul.f32 %v3065_v52, %v2172_v4  ;;  %v2221_v39 = vunpack.i.h.bf16 %v3308_v10 }
 0x128   :  { %v2261_v54 = vunpack.i.h.bf16 %v3420_v46  ;;  %1590 = vst.msk [vmem:[%s3779_s4 + $0x1b0] sm:$0xff] %vm1535_vm2, %v1525_v43  ;;  %v1517_v45 = vadd.f32 %v1453_v51, %v3565_v48  ;;  %v1464_v28 = vmul.f32 %v2326_v34, %v3407_v57  ;;  %v1463_v10 = vmul.f32 %v2325_v62, %v4035_v16  ;;  %v616_v46 = vpop.f32.mrf.mxu1 }
 0x129   :  { %v2336_v8 = vunpack.i.h.bf16 %v2334_v35  ;;  %v4037_v21 = vunpack.i.h.bf16 %v4036_v26  ;;  %1566 = vst.msk [vmem:[%s3779_s4 + $0xf0] sm:$0xff] %vm1535_vm2, %v1501_v30  ;;  %v2335_v61 = vunpack.i.l.bf16 %v2334_v35  ;;  %v1422_v58 = vmul.f32 %v2221_v39, %v576_v53  ;;  %v656_v41 = vpop.f32.mrf.mxu2 }
 0x12a   :  { %v1438_v18 = vmul.f32 %v2261_v54, %v616_v46  ;;  %v4039_v48 = vunpack.c.h.bf16 %v4038_v17  ;;  %1582 = vst.msk [vmem:[%s3779_s4 + $0x170] sm:$0xff] %vm1535_vm2, %v1517_v45  ;;  %v1527_v57 = vadd.f32 %v1463_v10, %v1143_v19  ;;  %v1528_v5 = vadd.f32 %v1464_v28, %v1144_v31 }
 0x12b   :  { %v1070_v44 = vmul.f32 %v3065_v52, %v4037_v21  ;;  %v1468_v52 = vmul.f32 %v2336_v8, %v3643_v22  ;;  %v1086_v1 = vmul.f32 %v2343_v59, %v2178_v27  ;;  %v4040_v6 = vunpack.c.l.bf16 %v4038_v17 }
 0x12c   :  { %v1148_v13 = vadd.f32 %v4039_v48, %v1084_v14  ;;  %v1467_v37 = vmul.f32 %v2335_v61, %v3582_v55  ;;  %v4041_v25 = vunpack.c.h.bf16 %v4029_v2  ;;  %v1085_v38 = vmul.f32 %v2343_v59, %v2177_v60  ;;  %1592 = vst.msk [vmem:[%s3779_s4 + $0x1c0] sm:$0xff] %vm1535_vm2, %v1527_v57  ;;  %v696_v56 = vpop.f32.mrf.mxu3 }
 0x12d   :  { %v1147_v33 = vadd.f32 %v4040_v6, %v1083_v32  ;;  %v2301_v15 = vunpack.i.h.bf16 %v3410_v3  ;;  %v1486_v7 = vadd.f32 %v1422_v58, %v4042_v63  ;;  %1593 = vst.msk [vmem:[%s3779_s4 + $0x1c8] sm:$0xff] %vm1535_vm2, %v1528_v5  ;;  %v4043_v3 = vunpack.c.h.bf16 %v4008_v49 }
 0x12e   :  { %v1118_v0 = vadd.f32 %v4041_v25, %v3613_v40  ;;  %v1532_v22 = vadd.f32 %v1468_v52, %v1148_v13  ;;  %v2339_v40 = vpop.permute.xlu1 %2338  ;;  %v4045_v31 = vunpack.c.h.bf16 %v4044_v50  ;;  %v4046_v9 = vunpack.c.l.bf16 %v4044_v50 }
 0x12f   :  { %v1531_v55 = vadd.f32 %v1467_v37, %v1147_v33  ;;  %v1134_v2 = vadd.f32 %v4043_v3, %v1070_v44  ;;  %v1454_v12 = vmul.f32 %v2301_v15, %v656_v41  ;;  %v2341_v47 = vunpack.i.h.bf16 %v2339_v40  ;;  %1551 = vst.msk [vmem:[%s3779_s4 + $0x78] sm:$0xff] %vm1535_vm2, %v1486_v7 }
 0x130   :  { %v1502_v4 = vadd.f32 %v1438_v18, %v1118_v0  ;;  %1597 = vst.msk [vmem:[%s3779_s4 + $0x1e8] sm:$0xff] %vm1535_vm2, %v1532_v22  ;;  %v2340_v20 = vunpack.i.l.bf16 %v2339_v40  ;;  %v1150_v24 = vadd.f32 %v4045_v31, %v1086_v1  ;;  %v1149_v23 = vadd.f32 %v4046_v9, %v1085_v38 }
 0x131   :  { %1596 = vst.msk [vmem:[%s3779_s4 + $0x1e0] sm:$0xff] %vm1535_vm2, %v1531_v55  ;;  %v1518_v49 = vadd.f32 %v1454_v12, %v1134_v2  ;;  %v1470_v19 = vmul.f32 %v2341_v47, %v696_v56 }
 0x132   :  { %v1469_v42 = vmul.f32 %v2340_v20, %v694_v29  ;;  %1567 = vst.msk [vmem:[%s3779_s4 + $0xf8] sm:$0xff] %vm1535_vm2, %v1502_v4 }
 0x133   :  { %1583 = vst.msk [vmem:[%s3779_s4 + $0x178] sm:$0xff] %vm1535_vm2, %v1518_v49  ;;  %v1534_v43 = vadd.f32 %v1470_v19, %v1150_v24 }
 0x134   :  { %v1533_v27 = vadd.f32 %v1469_v42, %v1149_v23 }
 0x135   :  { %1599 = vst.msk [vmem:[%s3779_s4 + $0x1f8] sm:$0xff] %vm1535_vm2, %v1534_v43 }
 0x136   :  { %1598 = vst.msk [vmem:[%s3779_s4 + $0x1f0] sm:$0xff] %vm1535_vm2, %v1533_v27 }

</bundles_post_ra>
